<compile_context>
chip_gen: v5e
topology: v5e:2x2
jax: 0.10.0
libtpu: 0.0.40
codegen_flags: <defaults>
</compile_context>

<pallas_src>
import jax
import jax.numpy as jnp
import numpy as np
from jax import lax
from jax.experimental import pallas as pl
from jax.experimental.pallas import tpu as pltpu

# --- problem constants: Conv2d(3,6,5) -> {ConvTranspose2d(6,16,3), MaxPool2d(2,2)} ---
CIN, H, W = 3, 20, 20
C1, K1 = 6, 5                            # conv1 (out channels, kernel)
C2, K2 = 16, 3                           # conv-transpose (out channels, kernel)
H1, W1 = H - K1 + 1, W - K1 + 1          # 16, 16  conv1 output image
H2, W2 = H1 + K2 - 1, W1 + K2 - 1        # 18, 18  conv-transpose output image
HP, WP = H1 // 2, W1 // 2                # 8, 8    pooled output image
HW = H * W                               # 400     flat image size

CINP, C1P = 8, 8                         # channel counts zero-padded to one sublane tile
PADQ = K2 - 1                            # zero-padding of y1 required by the transposed conv
OFF = PADQ * W + PADQ                    # 42: flat offset of y1[0,0] on the padded 20-wide grid
LANE = 128


def _round_up(n, m):
    return -(-n // m) * m


Q2P = _round_up(HW, LANE)                                     # 512: conv2 / pool output lane width
Q1P = _round_up(OFF + W + 1 + Q2P, LANE)                      # 640: y1 working-grid lane width
XWP = _round_up((K1 - 1) * (W + 1) + Q1P, LANE)               # 768: zero-extended input lane width
KK1 = K1 * K1 * CINP                                          # 200: fused contraction dim of conv1
KK2 = K2 * K2 * C1P                                           # 72:  fused contraction dim of conv2

# --- static asserts tying the flat-grid overcompute scheme to the wrapper's slice bounds ---
assert OFF == PADQ * (W + 1)
assert Q2P >= HW and Q2P % LANE == 0
assert Q1P % W == 0 and Q1P % LANE == 0                       # out1 reshape into W-wide rows
assert Q1P >= OFF + W + 1 + Q2P                               # pool slices of y1 stay in range
assert Q1P >= (K2 - 1) * (W + 1) + Q2P                        # conv2 stack slices stay in range
assert XWP >= (K1 - 1) * (W + 1) + Q1P                        # conv1 stack slices stay in range
assert OFF + HW <= XWP                                        # input placement fits in x_ext
assert OFF + (H1 - 1) * W + W1 <= Q1P                         # y1 interior fully covered


# ---------------- fused Pallas kernel ----------------

def _fused_forward_kernel(x_ref, w1_ref, b1_ref, w2_ref, b2_ref, mask_ref,
                          out1_ref, out2_ref, out3_ref,
                          xext_ref, stk1_ref, stk2_ref):
    # --- zero-extended flat input built directly in VMEM (no wrapper-side pad/HBM roundtrip) ---
    xext_ref[...] = jnp.zeros_like(xext_ref)
    xext_ref[0:CIN, OFF:OFF + HW] = x_ref[...]
    xv = xext_ref[...]                                        # (CINP, XWP)

    # --- c1: Conv2d(3,6,5) as ONE MXU matmul.  Each shifted window slice is built exactly
    #     once (sublane-aligned store into the stacked-K scratch), then (8,200)@(200,640). ---
    for t in range(K1 * K1):
        kh, kw = divmod(t, K1)
        s = kh * W + kw
        stk1_ref[t * CINP:(t + 1) * CINP, :] = xv[:, s:s + Q1P]
    y1 = (jnp.dot(w1_ref[...], stk1_ref[...], preferred_element_type=jnp.float32)
          + b1_ref[...])                                      # (C1P, Q1P), lane-broadcast bias
    out1_ref[...] = jnp.maximum(y1, 0.0)                      # relu1(conv1) -- unmasked stores

    # --- c2: ConvTranspose2d(6,16,3) == conv of the zero-padded y1 image with the flipped
    #     kernel.  Mask selects the real y1 interior (everything else is overcompute -> 0),
    #     then one fused-K matmul (16,72)@(72,512). ---
    y1pad = y1 * mask_ref[...]
    for t in range(K2 * K2):
        kh, kw = divmod(t, K2)
        s = kh * W + kw
        stk2_ref[t * C1P:(t + 1) * C1P, :] = y1pad[:, s:s + Q2P]
    y2 = (jnp.dot(w2_ref[...], stk2_ref[...], preferred_element_type=jnp.float32)
          + b2_ref[...])                                      # (C2, Q2P)
    out2_ref[...] = jnp.maximum(y2, 0.0)                      # relu2(conv_transpose)

    # --- p1: 2x2 stride-2 max pool of y1 (four shifted VPU maxes), then relu.
    #     Lanes >= HW are well-defined overcompute junk that the wrapper slices off. ---
    # TODO(synk): an in-kernel even-lane compaction (roll-based swizzle) could store only the
    # 64 valid pooled lanes per channel; left as-is since the XLU gather would cost more than
    # the saved epilogue at this size.
    p00 = y1[:, OFF:OFF + Q2P]
    p01 = y1[:, OFF + 1:OFF + 1 + Q2P]
    p10 = y1[:, OFF + W:OFF + W + Q2P]
    p11 = y1[:, OFF + W + 1:OFF + W + 1 + Q2P]
    out3_ref[...] = jnp.maximum(
        jnp.maximum(jnp.maximum(p00, p01), jnp.maximum(p10, p11)), 0.0)


def _call_fused(xf, w1f, b1c, w2f, b2c, mask):
    # Single invocation (no grid): the whole problem is a few hundred KB of VMEM, so any
    # tiling would be pure per-step overhead.
    # TODO(synk): if batch > 1 were ever required, add a leading batch grid axis with
    # dimension_semantics=("parallel",) so both v7x TensorCores get work and the launch/DMA
    # fixed cost is amortized over many images per pallas_call.
    flops = 2 * (C1P * KK1 * Q1P + C2 * KK2 * Q2P)
    bytes_accessed = 4 * (CIN * HW + C1P * KK1 + C2 * KK2 + C1P + C2 + C1P * Q1P
                          + C1P * Q1P + C2 * Q2P + C1P * Q2P)
    return pl.pallas_call(
        _fused_forward_kernel,
        out_shape=(jax.ShapeDtypeStruct((C1P, Q1P), jnp.float32),
                   jax.ShapeDtypeStruct((C2, Q2P), jnp.float32),
                   jax.ShapeDtypeStruct((C1P, Q2P), jnp.float32)),
        in_specs=[pl.BlockSpec(memory_space=pltpu.MemorySpace.VMEM) for _ in range(6)],
        out_specs=(pl.BlockSpec(memory_space=pltpu.MemorySpace.VMEM),
                   pl.BlockSpec(memory_space=pltpu.MemorySpace.VMEM),
                   pl.BlockSpec(memory_space=pltpu.MemorySpace.VMEM)),
        scratch_shapes=[pltpu.VMEM((CINP, XWP), jnp.float32),   # zero-extended input
                        pltpu.VMEM((KK1, Q1P), jnp.float32),    # conv1 stacked-K operand
                        pltpu.VMEM((KK2, Q2P), jnp.float32)],   # conv2 stacked-K operand
        cost_estimate=pl.CostEstimate(flops=flops, transcendentals=0,
                                      bytes_accessed=bytes_accessed),
    )(xf, w1f, b1c, w2f, b2c, mask)


# ---------------- one-time parameter preparation (hoisted out of the hot path) ----------------

def prepare_params(params):
    w1, b1, w2, b2 = params
    # conv1 weights -> lane-dense (C1P, K1*K1*CINP): w1f[o, (kh*K1+kw)*CINP + c] = w1[o,c,kh,kw]
    w1p = jnp.pad(jnp.transpose(w1, (0, 2, 3, 1)),
                  ((0, C1P - C1), (0, 0), (0, 0), (0, CINP - CIN)))
    w1f = w1p.reshape(C1P, KK1).astype(jnp.float32)
    # conv-transpose == conv with the spatially flipped, in/out-swapped kernel
    # -> lane-dense (C2, K2*K2*C1P): w2f[o, (kh*K2+kw)*C1P + c] = w2[c, o, K2-1-kh, K2-1-kw]
    w2p = jnp.pad(jnp.transpose(w2[:, :, ::-1, ::-1], (1, 2, 3, 0)),
                  ((0, 0), (0, 0), (0, 0), (0, C1P - C1)))
    w2f = w2p.reshape(C2, KK2).astype(jnp.float32)
    b1c = jnp.pad(b1.reshape(C1, 1), ((0, C1P - C1), (0, 0))).astype(jnp.float32)
    b2c = b2.reshape(C2, 1).astype(jnp.float32)
    # interior mask of the flat, zero-padded y1 grid (ties OFF/PADQ/H1/W1 to the slice bounds)
    q = np.arange(Q1P)
    row, col = q // W, q % W
    interior = ((row >= PADQ) & (row < PADQ + H1) &
                (col >= PADQ) & (col < PADQ + W1)).astype(np.float32)
    mask = jnp.asarray(np.broadcast_to(interior, (C1P, Q1P)).copy())
    return w1f, b1c, w2f, b2c, mask


# ---------------- per-forward wrapper ----------------

def model_forward(x, prep):
    w1f, b1c, w2f, b2c, mask = prep
    # batch is fixed at 1 by the module spec; input passed flat, zero-extension is in-kernel
    xf = x.reshape(CIN, HW).astype(jnp.float32)
    out1f, out2f, out3f = _call_fused(xf, w1f, b1c, w2f, b2c, mask)
    x_out1 = out1f.reshape(C1P, Q1P // W, W)[:C1, PADQ:PADQ + H1, PADQ:PADQ + W1]
    x_out1 = x_out1.reshape(1, C1, H1, W1)                                       # relu1(conv1)
    x_out2 = out2f[:, :HW].reshape(C2, H, W)[:, :H2, :W2].reshape(1, C2, H2, W2)  # relu2(convT)
    x_out3 = out3f[:, :HW].reshape(C1P, H, W)[:C1, 0:H1:2, 0:W1:2]
    x_out3 = x_out3.reshape(1, C1, HP, WP)                                       # relu2(maxpool)
    # TODO(synk): the original forward returns x_out1 * x_out2 * x_out3, but the shapes
    # (1,6,16,16)*(1,16,18,18)*(1,6,8,8) are not broadcast-compatible and PyTorch itself raises
    # at runtime; as a spec decision the three branch activations are returned instead.
    return x_out1, x_out2, x_out3


# ---------------- reference (pure JAX) for sanity check ----------------

def reference_forward(x, params):
    w1, b1, w2, b2 = params
    dn = ('NCHW', 'OIHW', 'NCHW')
    hp = lax.Precision.HIGHEST
    y1 = lax.conv_general_dilated(x, w1, (1, 1), 'VALID', dimension_numbers=dn,
                                  precision=hp) + b1[None, :, None, None]
    out1 = jnp.maximum(y1, 0.0)
    w2_eq = jnp.transpose(w2, (1, 0, 2, 3))[:, :, ::-1, ::-1]   # (16,6,3,3)
    y2 = lax.conv_general_dilated(y1, w2_eq, (1, 1), ((2, 2), (2, 2)),
                                  dimension_numbers=dn, precision=hp) + b2[None, :, None, None]
    out2 = jnp.maximum(y2, 0.0)
    pooled = lax.reduce_window(y1, -jnp.inf, lax.max, (1, 1, 2, 2), (1, 1, 2, 2), 'VALID')
    out3 = jnp.maximum(pooled, 0.0)
    return out1, out2, out3


if __name__ == "__main__":
    key = jax.random.PRNGKey(0)
    kx, k1, k2, k3, k4 = jax.random.split(key, 5)

    # input consistent with the module's example: (1, 3, 20, 20)
    x = jax.random.normal(kx, (1, CIN, H, W), dtype=jnp.float32)

    # deterministic parameters (PyTorch-style uniform fan-in scaling)
    fan1 = CIN * K1 * K1
    w1 = jax.random.uniform(k1, (C1, CIN, K1, K1), jnp.float32,
                            -1.0 / np.sqrt(fan1), 1.0 / np.sqrt(fan1))
    b1 = jax.random.uniform(k2, (C1,), jnp.float32,
                            -1.0 / np.sqrt(fan1), 1.0 / np.sqrt(fan1))
    fan2 = C2 * K2 * K2
    w2 = jax.random.uniform(k3, (C1, C2, K2, K2), jnp.float32,
                            -1.0 / np.sqrt(fan2), 1.0 / np.sqrt(fan2))
    b2 = jax.random.uniform(k4, (C2,), jnp.float32,
                            -1.0 / np.sqrt(fan2), 1.0 / np.sqrt(fan2))
    params = (w1, b1, w2, b2)

    prep = jax.block_until_ready(prepare_params(params))       # hoisted, one-time
    fwd = jax.jit(model_forward)
    outs = jax.block_until_ready(fwd(x, prep))

    refs = reference_forward(x, params)
    # Tolerance tightened 4x vs the previous version; kept at 5e-3 only to cover a possible
    # bf16-pass MXU lowering of the f32 dots in either the kernel or the XLA reference path.
    for o, r in zip(outs, refs):
        assert o.shape == r.shape, (o.shape, r.shape)
        np.testing.assert_allclose(np.asarray(o), np.asarray(r), rtol=5e-3, atol=5e-3)

    print("KERNEL_OK")
</pallas_src>

<mosaic_0001>
module attributes {stable_mosaic.version = 11 : i64} {
  func.func @_fused_forward_kernel(%arg0: memref<3x400xf32, #tpu.memory_space<vmem>>, %arg1: memref<8x200xf32, #tpu.memory_space<vmem>>, %arg2: memref<8x1xf32, #tpu.memory_space<vmem>>, %arg3: memref<16x72xf32, #tpu.memory_space<vmem>>, %arg4: memref<16x1xf32, #tpu.memory_space<vmem>>, %arg5: memref<8x640xf32, #tpu.memory_space<vmem>>, %arg6: memref<8x640xf32, #tpu.memory_space<vmem>>, %arg7: memref<16x512xf32, #tpu.memory_space<vmem>>, %arg8: memref<8x512xf32, #tpu.memory_space<vmem>>, %arg9: memref<8x768xf32, #tpu.memory_space<vmem>>, %arg10: memref<200x640xf32, #tpu.memory_space<vmem>>, %arg11: memref<72x512xf32, #tpu.memory_space<vmem>>) attributes {dimension_semantics = [], scalar_prefetch = 0 : i64, scratch_operands = 3 : i64, tpu.core_type = #tpu.core_type<tc>} {
    %cst = arith.constant 0.000000e+00 : f32
    %0 = vector.broadcast %cst : f32 to vector<8x768xf32>
    %c0 = arith.constant 0 : index
    %c0_0 = arith.constant 0 : index
    %1 = vector.load %arg9[%c0, %c0_0] : memref<8x768xf32, #tpu.memory_space<vmem>>, vector<8x768xf32>
    tpu.vector_store %arg9[%c0, %c0_0], %0 {strides = array<i32>} : memref<8x768xf32, #tpu.memory_space<vmem>>, vector<8x768xf32>,
    %c0_1 = arith.constant 0 : index
    %c0_2 = arith.constant 0 : index
    %2 = vector.load %arg0[%c0_1, %c0_2] : memref<3x400xf32, #tpu.memory_space<vmem>>, vector<3x400xf32>
    %c0_3 = arith.constant 0 : index
    %c42 = arith.constant 42 : index
    %3 = vector.load %arg9[%c0_3, %c42] : memref<8x768xf32, #tpu.memory_space<vmem>>, vector<3x400xf32>
    tpu.vector_store %arg9[%c0_3, %c42], %2 {strides = array<i32>} : memref<8x768xf32, #tpu.memory_space<vmem>>, vector<3x400xf32>,
    %c0_4 = arith.constant 0 : index
    %c0_5 = arith.constant 0 : index
    %4 = vector.load %arg9[%c0_4, %c0_5] : memref<8x768xf32, #tpu.memory_space<vmem>>, vector<8x768xf32>
    %5 = vector.extract_strided_slice %4 {offsets = [0, 0], sizes = [8, 640], strides = [1, 1]} : vector<8x768xf32> to vector<8x640xf32>
    %c0_6 = arith.constant 0 : index
    %c0_7 = arith.constant 0 : index
    %6 = vector.load %arg10[%c0_6, %c0_7] : memref<200x640xf32, #tpu.memory_space<vmem>>, vector<8x640xf32>
    tpu.vector_store %arg10[%c0_6, %c0_7], %5 {strides = array<i32>} : memref<200x640xf32, #tpu.memory_space<vmem>>, vector<8x640xf32>,
    %7 = vector.extract_strided_slice %4 {offsets = [0, 1], sizes = [8, 640], strides = [1, 1]} : vector<8x768xf32> to vector<8x640xf32>
    %c8 = arith.constant 8 : index
    %c0_8 = arith.constant 0 : index
    %8 = vector.load %arg10[%c8, %c0_8] : memref<200x640xf32, #tpu.memory_space<vmem>>, vector<8x640xf32>
    tpu.vector_store %arg10[%c8, %c0_8], %7 {strides = array<i32>} : memref<200x640xf32, #tpu.memory_space<vmem>>, vector<8x640xf32>,
    %9 = vector.extract_strided_slice %4 {offsets = [0, 2], sizes = [8, 640], strides = [1, 1]} : vector<8x768xf32> to vector<8x640xf32>
    %c16 = arith.constant 16 : index
    %c0_9 = arith.constant 0 : index
    %10 = vector.load %arg10[%c16, %c0_9] : memref<200x640xf32, #tpu.memory_space<vmem>>, vector<8x640xf32>
    tpu.vector_store %arg10[%c16, %c0_9], %9 {strides = array<i32>} : memref<200x640xf32, #tpu.memory_space<vmem>>, vector<8x640xf32>,
    %11 = vector.extract_strided_slice %4 {offsets = [0, 3], sizes = [8, 640], strides = [1, 1]} : vector<8x768xf32> to vector<8x640xf32>
    %c24 = arith.constant 24 : index
    %c0_10 = arith.constant 0 : index
    %12 = vector.load %arg10[%c24, %c0_10] : memref<200x640xf32, #tpu.memory_space<vmem>>, vector<8x640xf32>
    tpu.vector_store %arg10[%c24, %c0_10], %11 {strides = array<i32>} : memref<200x640xf32, #tpu.memory_space<vmem>>, vector<8x640xf32>,
    %13 = vector.extract_strided_slice %4 {offsets = [0, 4], sizes = [8, 640], strides = [1, 1]} : vector<8x768xf32> to vector<8x640xf32>
    %c32 = arith.constant 32 : index
    %c0_11 = arith.constant 0 : index
    %14 = vector.load %arg10[%c32, %c0_11] : memref<200x640xf32, #tpu.memory_space<vmem>>, vector<8x640xf32>
    tpu.vector_store %arg10[%c32, %c0_11], %13 {strides = array<i32>} : memref<200x640xf32, #tpu.memory_space<vmem>>, vector<8x640xf32>,
    %15 = vector.extract_strided_slice %4 {offsets = [0, 20], sizes = [8, 640], strides = [1, 1]} : vector<8x768xf32> to vector<8x640xf32>
    %c40 = arith.constant 40 : index
    %c0_12 = arith.constant 0 : index
    %16 = vector.load %arg10[%c40, %c0_12] : memref<200x640xf32, #tpu.memory_space<vmem>>, vector<8x640xf32>
    tpu.vector_store %arg10[%c40, %c0_12], %15 {strides = array<i32>} : memref<200x640xf32, #tpu.memory_space<vmem>>, vector<8x640xf32>,
    %17 = vector.extract_strided_slice %4 {offsets = [0, 21], sizes = [8, 640], strides = [1, 1]} : vector<8x768xf32> to vector<8x640xf32>
    %c48 = arith.constant 48 : index
    %c0_13 = arith.constant 0 : index
    %18 = vector.load %arg10[%c48, %c0_13] : memref<200x640xf32, #tpu.memory_space<vmem>>, vector<8x640xf32>
    tpu.vector_store %arg10[%c48, %c0_13], %17 {strides = array<i32>} : memref<200x640xf32, #tpu.memory_space<vmem>>, vector<8x640xf32>,
    %19 = vector.extract_strided_slice %4 {offsets = [0, 22], sizes = [8, 640], strides = [1, 1]} : vector<8x768xf32> to vector<8x640xf32>
    %c56 = arith.constant 56 : index
    %c0_14 = arith.constant 0 : index
    %20 = vector.load %arg10[%c56, %c0_14] : memref<200x640xf32, #tpu.memory_space<vmem>>, vector<8x640xf32>
    tpu.vector_store %arg10[%c56, %c0_14], %19 {strides = array<i32>} : memref<200x640xf32, #tpu.memory_space<vmem>>, vector<8x640xf32>,
    %21 = vector.extract_strided_slice %4 {offsets = [0, 23], sizes = [8, 640], strides = [1, 1]} : vector<8x768xf32> to vector<8x640xf32>
    %c64 = arith.constant 64 : index
    %c0_15 = arith.constant 0 : index
    %22 = vector.load %arg10[%c64, %c0_15] : memref<200x640xf32, #tpu.memory_space<vmem>>, vector<8x640xf32>
    tpu.vector_store %arg10[%c64, %c0_15], %21 {strides = array<i32>} : memref<200x640xf32, #tpu.memory_space<vmem>>, vector<8x640xf32>,
    %23 = vector.extract_strided_slice %4 {offsets = [0, 24], sizes = [8, 640], strides = [1, 1]} : vector<8x768xf32> to vector<8x640xf32>
    %c72 = arith.constant 72 : index
    %c0_16 = arith.constant 0 : index
    %24 = vector.load %arg10[%c72, %c0_16] : memref<200x640xf32, #tpu.memory_space<vmem>>, vector<8x640xf32>
    tpu.vector_store %arg10[%c72, %c0_16], %23 {strides = array<i32>} : memref<200x640xf32, #tpu.memory_space<vmem>>, vector<8x640xf32>,
    %25 = vector.extract_strided_slice %4 {offsets = [0, 40], sizes = [8, 640], strides = [1, 1]} : vector<8x768xf32> to vector<8x640xf32>
    %c80 = arith.constant 80 : index
    %c0_17 = arith.constant 0 : index
    %26 = vector.load %arg10[%c80, %c0_17] : memref<200x640xf32, #tpu.memory_space<vmem>>, vector<8x640xf32>
    tpu.vector_store %arg10[%c80, %c0_17], %25 {strides = array<i32>} : memref<200x640xf32, #tpu.memory_space<vmem>>, vector<8x640xf32>,
    %27 = vector.extract_strided_slice %4 {offsets = [0, 41], sizes = [8, 640], strides = [1, 1]} : vector<8x768xf32> to vector<8x640xf32>
    %c88 = arith.constant 88 : index
    %c0_18 = arith.constant 0 : index
    %28 = vector.load %arg10[%c88, %c0_18] : memref<200x640xf32, #tpu.memory_space<vmem>>, vector<8x640xf32>
    tpu.vector_store %arg10[%c88, %c0_18], %27 {strides = array<i32>} : memref<200x640xf32, #tpu.memory_space<vmem>>, vector<8x640xf32>,
    %29 = vector.extract_strided_slice %4 {offsets = [0, 42], sizes = [8, 640], strides = [1, 1]} : vector<8x768xf32> to vector<8x640xf32>
    %c96 = arith.constant 96 : index
    %c0_19 = arith.constant 0 : index
    %30 = vector.load %arg10[%c96, %c0_19] : memref<200x640xf32, #tpu.memory_space<vmem>>, vector<8x640xf32>
    tpu.vector_store %arg10[%c96, %c0_19], %29 {strides = array<i32>} : memref<200x640xf32, #tpu.memory_space<vmem>>, vector<8x640xf32>,
    %31 = vector.extract_strided_slice %4 {offsets = [0, 43], sizes = [8, 640], strides = [1, 1]} : vector<8x768xf32> to vector<8x640xf32>
    %c104 = arith.constant 104 : index
    %c0_20 = arith.constant 0 : index
    %32 = vector.load %arg10[%c104, %c0_20] : memref<200x640xf32, #tpu.memory_space<vmem>>, vector<8x640xf32>
    tpu.vector_store %arg10[%c104, %c0_20], %31 {strides = array<i32>} : memref<200x640xf32, #tpu.memory_space<vmem>>, vector<8x640xf32>,
    %33 = vector.extract_strided_slice %4 {offsets = [0, 44], sizes = [8, 640], strides = [1, 1]} : vector<8x768xf32> to vector<8x640xf32>
    %c112 = arith.constant 112 : index
    %c0_21 = arith.constant 0 : index
    %34 = vector.load %arg10[%c112, %c0_21] : memref<200x640xf32, #tpu.memory_space<vmem>>, vector<8x640xf32>
    tpu.vector_store %arg10[%c112, %c0_21], %33 {strides = array<i32>} : memref<200x640xf32, #tpu.memory_space<vmem>>, vector<8x640xf32>,
    %35 = vector.extract_strided_slice %4 {offsets = [0, 60], sizes = [8, 640], strides = [1, 1]} : vector<8x768xf32> to vector<8x640xf32>
    %c120 = arith.constant 120 : index
    %c0_22 = arith.constant 0 : index
    %36 = vector.load %arg10[%c120, %c0_22] : memref<200x640xf32, #tpu.memory_space<vmem>>, vector<8x640xf32>
    tpu.vector_store %arg10[%c120, %c0_22], %35 {strides = array<i32>} : memref<200x640xf32, #tpu.memory_space<vmem>>, vector<8x640xf32>,
    %37 = vector.extract_strided_slice %4 {offsets = [0, 61], sizes = [8, 640], strides = [1, 1]} : vector<8x768xf32> to vector<8x640xf32>
    %c128 = arith.constant 128 : index
    %c0_23 = arith.constant 0 : index
    %38 = vector.load %arg10[%c128, %c0_23] : memref<200x640xf32, #tpu.memory_space<vmem>>, vector<8x640xf32>
    tpu.vector_store %arg10[%c128, %c0_23], %37 {strides = array<i32>} : memref<200x640xf32, #tpu.memory_space<vmem>>, vector<8x640xf32>,
    %39 = vector.extract_strided_slice %4 {offsets = [0, 62], sizes = [8, 640], strides = [1, 1]} : vector<8x768xf32> to vector<8x640xf32>
    %c136 = arith.constant 136 : index
    %c0_24 = arith.constant 0 : index
    %40 = vector.load %arg10[%c136, %c0_24] : memref<200x640xf32, #tpu.memory_space<vmem>>, vector<8x640xf32>
    tpu.vector_store %arg10[%c136, %c0_24], %39 {strides = array<i32>} : memref<200x640xf32, #tpu.memory_space<vmem>>, vector<8x640xf32>,
    %41 = vector.extract_strided_slice %4 {offsets = [0, 63], sizes = [8, 640], strides = [1, 1]} : vector<8x768xf32> to vector<8x640xf32>
    %c144 = arith.constant 144 : index
    %c0_25 = arith.constant 0 : index
    %42 = vector.load %arg10[%c144, %c0_25] : memref<200x640xf32, #tpu.memory_space<vmem>>, vector<8x640xf32>
    tpu.vector_store %arg10[%c144, %c0_25], %41 {strides = array<i32>} : memref<200x640xf32, #tpu.memory_space<vmem>>, vector<8x640xf32>,
    %43 = vector.extract_strided_slice %4 {offsets = [0, 64], sizes = [8, 640], strides = [1, 1]} : vector<8x768xf32> to vector<8x640xf32>
    %c152 = arith.constant 152 : index
    %c0_26 = arith.constant 0 : index
    %44 = vector.load %arg10[%c152, %c0_26] : memref<200x640xf32, #tpu.memory_space<vmem>>, vector<8x640xf32>
    tpu.vector_store %arg10[%c152, %c0_26], %43 {strides = array<i32>} : memref<200x640xf32, #tpu.memory_space<vmem>>, vector<8x640xf32>,
    %45 = vector.extract_strided_slice %4 {offsets = [0, 80], sizes = [8, 640], strides = [1, 1]} : vector<8x768xf32> to vector<8x640xf32>
    %c160 = arith.constant 160 : index
    %c0_27 = arith.constant 0 : index
    %46 = vector.load %arg10[%c160, %c0_27] : memref<200x640xf32, #tpu.memory_space<vmem>>, vector<8x640xf32>
    tpu.vector_store %arg10[%c160, %c0_27], %45 {strides = array<i32>} : memref<200x640xf32, #tpu.memory_space<vmem>>, vector<8x640xf32>,
    %47 = vector.extract_strided_slice %4 {offsets = [0, 81], sizes = [8, 640], strides = [1, 1]} : vector<8x768xf32> to vector<8x640xf32>
    %c168 = arith.constant 168 : index
    %c0_28 = arith.constant 0 : index
    %48 = vector.load %arg10[%c168, %c0_28] : memref<200x640xf32, #tpu.memory_space<vmem>>, vector<8x640xf32>
    tpu.vector_store %arg10[%c168, %c0_28], %47 {strides = array<i32>} : memref<200x640xf32, #tpu.memory_space<vmem>>, vector<8x640xf32>,
    %49 = vector.extract_strided_slice %4 {offsets = [0, 82], sizes = [8, 640], strides = [1, 1]} : vector<8x768xf32> to vector<8x640xf32>
    %c176 = arith.constant 176 : index
    %c0_29 = arith.constant 0 : index
    %50 = vector.load %arg10[%c176, %c0_29] : memref<200x640xf32, #tpu.memory_space<vmem>>, vector<8x640xf32>
    tpu.vector_store %arg10[%c176, %c0_29], %49 {strides = array<i32>} : memref<200x640xf32, #tpu.memory_space<vmem>>, vector<8x640xf32>,
    %51 = vector.extract_strided_slice %4 {offsets = [0, 83], sizes = [8, 640], strides = [1, 1]} : vector<8x768xf32> to vector<8x640xf32>
    %c184 = arith.constant 184 : index
    %c0_30 = arith.constant 0 : index
    %52 = vector.load %arg10[%c184, %c0_30] : memref<200x640xf32, #tpu.memory_space<vmem>>, vector<8x640xf32>
    tpu.vector_store %arg10[%c184, %c0_30], %51 {strides = array<i32>} : memref<200x640xf32, #tpu.memory_space<vmem>>, vector<8x640xf32>,
    %53 = vector.extract_strided_slice %4 {offsets = [0, 84], sizes = [8, 640], strides = [1, 1]} : vector<8x768xf32> to vector<8x640xf32>
    %c192 = arith.constant 192 : index
    %c0_31 = arith.constant 0 : index
    %54 = vector.load %arg10[%c192, %c0_31] : memref<200x640xf32, #tpu.memory_space<vmem>>, vector<8x640xf32>
    tpu.vector_store %arg10[%c192, %c0_31], %53 {strides = array<i32>} : memref<200x640xf32, #tpu.memory_space<vmem>>, vector<8x640xf32>,
    %c0_32 = arith.constant 0 : index
    %c0_33 = arith.constant 0 : index
    %55 = vector.load %arg1[%c0_32, %c0_33] : memref<8x200xf32, #tpu.memory_space<vmem>>, vector<8x200xf32>
    %c0_34 = arith.constant 0 : index
    %c0_35 = arith.constant 0 : index
    %56 = vector.load %arg10[%c0_34, %c0_35] : memref<200x640xf32, #tpu.memory_space<vmem>>, vector<200x640xf32>
    %cst_36 = arith.constant dense<0.000000e+00> : vector<8x640xf32>
    %57 = tpu.matmul %55, %56, %cst_36 {dimension_numbers = #tpu.dot_dimension_numbers<[1], [0], [0], [1], [0, 0, 1, 1], [], []>} : vector<8x200xf32>, vector<200x640xf32>, vector<8x640xf32> -> vector<8x640xf32>
    %c0_37 = arith.constant 0 : index
    %c0_38 = arith.constant 0 : index
    %58 = vector.load %arg2[%c0_37, %c0_38] : memref<8x1xf32, #tpu.memory_space<vmem>>, vector<8x1xf32>
    %59 = vector.broadcast %58 : vector<8x1xf32> to vector<8x640xf32>
    %60 = arith.addf %57, %59 : vector<8x640xf32>
    %cst_39 = arith.constant 0.000000e+00 : f32
    %61 = vector.broadcast %cst_39 : f32 to vector<8x640xf32>
    %62 = arith.maximumf %60, %61 : vector<8x640xf32>
    %c0_40 = arith.constant 0 : index
    %c0_41 = arith.constant 0 : index
    %63 = vector.load %arg6[%c0_40, %c0_41] : memref<8x640xf32, #tpu.memory_space<vmem>>, vector<8x640xf32>
    tpu.vector_store %arg6[%c0_40, %c0_41], %62 {strides = array<i32>} : memref<8x640xf32, #tpu.memory_space<vmem>>, vector<8x640xf32>,
    %c0_42 = arith.constant 0 : index
    %c0_43 = arith.constant 0 : index
    %64 = vector.load %arg5[%c0_42, %c0_43] : memref<8x640xf32, #tpu.memory_space<vmem>>, vector<8x640xf32>
    %65 = arith.mulf %60, %64 : vector<8x640xf32>
    %66 = vector.extract_strided_slice %65 {offsets = [0, 0], sizes = [8, 512], strides = [1, 1]} : vector<8x640xf32> to vector<8x512xf32>
    %c0_44 = arith.constant 0 : index
    %c0_45 = arith.constant 0 : index
    %67 = vector.load %arg11[%c0_44, %c0_45] : memref<72x512xf32, #tpu.memory_space<vmem>>, vector<8x512xf32>
    tpu.vector_store %arg11[%c0_44, %c0_45], %66 {strides = array<i32>} : memref<72x512xf32, #tpu.memory_space<vmem>>, vector<8x512xf32>,
    %68 = vector.extract_strided_slice %65 {offsets = [0, 1], sizes = [8, 512], strides = [1, 1]} : vector<8x640xf32> to vector<8x512xf32>
    %c8_46 = arith.constant 8 : index
    %c0_47 = arith.constant 0 : index
    %69 = vector.load %arg11[%c8_46, %c0_47] : memref<72x512xf32, #tpu.memory_space<vmem>>, vector<8x512xf32>
    tpu.vector_store %arg11[%c8_46, %c0_47], %68 {strides = array<i32>} : memref<72x512xf32, #tpu.memory_space<vmem>>, vector<8x512xf32>,
    %70 = vector.extract_strided_slice %65 {offsets = [0, 2], sizes = [8, 512], strides = [1, 1]} : vector<8x640xf32> to vector<8x512xf32>
    %c16_48 = arith.constant 16 : index
    %c0_49 = arith.constant 0 : index
    %71 = vector.load %arg11[%c16_48, %c0_49] : memref<72x512xf32, #tpu.memory_space<vmem>>, vector<8x512xf32>
    tpu.vector_store %arg11[%c16_48, %c0_49], %70 {strides = array<i32>} : memref<72x512xf32, #tpu.memory_space<vmem>>, vector<8x512xf32>,
    %72 = vector.extract_strided_slice %65 {offsets = [0, 20], sizes = [8, 512], strides = [1, 1]} : vector<8x640xf32> to vector<8x512xf32>
    %c24_50 = arith.constant 24 : index
    %c0_51 = arith.constant 0 : index
    %73 = vector.load %arg11[%c24_50, %c0_51] : memref<72x512xf32, #tpu.memory_space<vmem>>, vector<8x512xf32>
    tpu.vector_store %arg11[%c24_50, %c0_51], %72 {strides = array<i32>} : memref<72x512xf32, #tpu.memory_space<vmem>>, vector<8x512xf32>,
    %74 = vector.extract_strided_slice %65 {offsets = [0, 21], sizes = [8, 512], strides = [1, 1]} : vector<8x640xf32> to vector<8x512xf32>
    %c32_52 = arith.constant 32 : index
    %c0_53 = arith.constant 0 : index
    %75 = vector.load %arg11[%c32_52, %c0_53] : memref<72x512xf32, #tpu.memory_space<vmem>>, vector<8x512xf32>
    tpu.vector_store %arg11[%c32_52, %c0_53], %74 {strides = array<i32>} : memref<72x512xf32, #tpu.memory_space<vmem>>, vector<8x512xf32>,
    %76 = vector.extract_strided_slice %65 {offsets = [0, 22], sizes = [8, 512], strides = [1, 1]} : vector<8x640xf32> to vector<8x512xf32>
    %c40_54 = arith.constant 40 : index
    %c0_55 = arith.constant 0 : index
    %77 = vector.load %arg11[%c40_54, %c0_55] : memref<72x512xf32, #tpu.memory_space<vmem>>, vector<8x512xf32>
    tpu.vector_store %arg11[%c40_54, %c0_55], %76 {strides = array<i32>} : memref<72x512xf32, #tpu.memory_space<vmem>>, vector<8x512xf32>,
    %78 = vector.extract_strided_slice %65 {offsets = [0, 40], sizes = [8, 512], strides = [1, 1]} : vector<8x640xf32> to vector<8x512xf32>
    %c48_56 = arith.constant 48 : index
    %c0_57 = arith.constant 0 : index
    %79 = vector.load %arg11[%c48_56, %c0_57] : memref<72x512xf32, #tpu.memory_space<vmem>>, vector<8x512xf32>
    tpu.vector_store %arg11[%c48_56, %c0_57], %78 {strides = array<i32>} : memref<72x512xf32, #tpu.memory_space<vmem>>, vector<8x512xf32>,
    %80 = vector.extract_strided_slice %65 {offsets = [0, 41], sizes = [8, 512], strides = [1, 1]} : vector<8x640xf32> to vector<8x512xf32>
    %c56_58 = arith.constant 56 : index
    %c0_59 = arith.constant 0 : index
    %81 = vector.load %arg11[%c56_58, %c0_59] : memref<72x512xf32, #tpu.memory_space<vmem>>, vector<8x512xf32>
    tpu.vector_store %arg11[%c56_58, %c0_59], %80 {strides = array<i32>} : memref<72x512xf32, #tpu.memory_space<vmem>>, vector<8x512xf32>,
    %82 = vector.extract_strided_slice %65 {offsets = [0, 42], sizes = [8, 512], strides = [1, 1]} : vector<8x640xf32> to vector<8x512xf32>
    %c64_60 = arith.constant 64 : index
    %c0_61 = arith.constant 0 : index
    %83 = vector.load %arg11[%c64_60, %c0_61] : memref<72x512xf32, #tpu.memory_space<vmem>>, vector<8x512xf32>
    tpu.vector_store %arg11[%c64_60, %c0_61], %82 {strides = array<i32>} : memref<72x512xf32, #tpu.memory_space<vmem>>, vector<8x512xf32>,
    %c0_62 = arith.constant 0 : index
    %c0_63 = arith.constant 0 : index
    %84 = vector.load %arg3[%c0_62, %c0_63] : memref<16x72xf32, #tpu.memory_space<vmem>>, vector<16x72xf32>
    %c0_64 = arith.constant 0 : index
    %c0_65 = arith.constant 0 : index
    %85 = vector.load %arg11[%c0_64, %c0_65] : memref<72x512xf32, #tpu.memory_space<vmem>>, vector<72x512xf32>
    %cst_66 = arith.constant dense<0.000000e+00> : vector<16x512xf32>
    %86 = tpu.matmul %84, %85, %cst_66 {dimension_numbers = #tpu.dot_dimension_numbers<[1], [0], [0], [1], [0, 0, 1, 1], [], []>} : vector<16x72xf32>, vector<72x512xf32>, vector<16x512xf32> -> vector<16x512xf32>
    %c0_67 = arith.constant 0 : index
    %c0_68 = arith.constant 0 : index
    %87 = vector.load %arg4[%c0_67, %c0_68] : memref<16x1xf32, #tpu.memory_space<vmem>>, vector<16x1xf32>
    %88 = vector.broadcast %87 : vector<16x1xf32> to vector<16x512xf32>
    %89 = arith.addf %86, %88 : vector<16x512xf32>
    %cst_69 = arith.constant 0.000000e+00 : f32
    %90 = vector.broadcast %cst_69 : f32 to vector<16x512xf32>
    %91 = arith.maximumf %89, %90 : vector<16x512xf32>
    %c0_70 = arith.constant 0 : index
    %c0_71 = arith.constant 0 : index
    %92 = vector.load %arg7[%c0_70, %c0_71] : memref<16x512xf32, #tpu.memory_space<vmem>>, vector<16x512xf32>
    tpu.vector_store %arg7[%c0_70, %c0_71], %91 {strides = array<i32>} : memref<16x512xf32, #tpu.memory_space<vmem>>, vector<16x512xf32>,
    %93 = vector.extract_strided_slice %60 {offsets = [0, 42], sizes = [8, 512], strides = [1, 1]} : vector<8x640xf32> to vector<8x512xf32>
    %94 = vector.extract_strided_slice %60 {offsets = [0, 43], sizes = [8, 512], strides = [1, 1]} : vector<8x640xf32> to vector<8x512xf32>
    %95 = vector.extract_strided_slice %60 {offsets = [0, 62], sizes = [8, 512], strides = [1, 1]} : vector<8x640xf32> to vector<8x512xf32>
    %96 = vector.extract_strided_slice %60 {offsets = [0, 63], sizes = [8, 512], strides = [1, 1]} : vector<8x640xf32> to vector<8x512xf32>
    %97 = arith.maximumf %93, %94 : vector<8x512xf32>
    %98 = arith.maximumf %95, %96 : vector<8x512xf32>
    %99 = arith.maximumf %97, %98 : vector<8x512xf32>
    %cst_72 = arith.constant 0.000000e+00 : f32
    %100 = vector.broadcast %cst_72 : f32 to vector<8x512xf32>
    %101 = arith.maximumf %99, %100 : vector<8x512xf32>
    %c0_73 = arith.constant 0 : index
    %c0_74 = arith.constant 0 : index
    %102 = vector.load %arg8[%c0_73, %c0_74] : memref<8x512xf32, #tpu.memory_space<vmem>>, vector<8x512xf32>
    tpu.vector_store %arg8[%c0_73, %c0_74], %101 {strides = array<i32>} : memref<8x512xf32, #tpu.memory_space<vmem>>, vector<8x512xf32>,
    return
  }
}

</mosaic_0001>

<bundles_post_ra>
// kernel: model_forward.1
= control target key start
LH: loop header
LB: loop body
LE: loop exit
PB: predicated region body
PF: predicated region fallthrough
CT: control target
= control target key end

     0   :  { %v3435_v2 = vmov 0.0   ;;  %s2011_s9 = smov 42   ;;  %s2013_s10 = smov 126   ;;  %vm59_vm0 = vcmask 1042768   ;;  %vm51_vm1 = vcmask 343040   ;;  %vm63_vm2 = vcmask 468992   ;;  %s3374_s0 = inlined_call_operand.vmem [shape: f32[3,400], index: 0, kind: input, shape index: {}]   ;;  %s3375_s1 = inlined_call_operand.vmem [shape: f32[8,200], index: 1, kind: input, shape index: {}]   ;;  %s3376_s2 = inlined_call_operand.vmem [shape: f32[8,1], index: 2, kind: input, shape index: {}]   ;;  %s3377_s5 = inlined_call_operand.vmem [shape: f32[8,640], index: 5, kind: input, shape index: {}]   ;;  %s3378_s6 = inlined_call_operand.vmem [shape: f32[8,640], index: 6, kind: output, shape index: {0}]   ;;  %s3379_s3 = inlined_call_operand.vmem [shape: f32[16,72], index: 3, kind: input, shape index: {}]   ;;  %s3380_s4 = inlined_call_operand.vmem [shape: f32[16,1], index: 4, kind: input, shape index: {}]   ;;  %s3381_s7 = inlined_call_operand.vmem [shape: f32[16,512], index: 7, kind: output, shape index: {1}]   ;;  %s3382_s8 = inlined_call_operand.vmem [shape: f32[8,512], index: 8, kind: output, shape index: {2}]  }
   0x1   :  { %v33_v0 = vld [vmem:[%s3374_s0 + $0x8] sm:$0x77]  ;;  %v32_v1 = vld [vmem:[%s3374_s0] sm:$0x77]  ;;  %30 = vst [vmem:[#allocation2 + $0x20] sm:$0xff] %v3435_v2  ;;  %s2012_s0 = smov 127  }
   0x2   :  { %38 = vst [vmem:[#allocation1 + $0x10] ss:$2 sm:$0xff] %v33_v0  ;;  %s2014_s11 = smov 125   ;;  %s2015_s12 = smov 124   ;;  %vm3439_vm3 = vcmask 1039360   ;;  %vm3443_vm4 = vcmask 1031168  }
   0x3   :  { %36 = vst [vmem:[#allocation1] ss:$2 sm:$0xff] %v32_v1  ;;  %s2016_s13 = smov 108   ;;  %s2017_s14 = smov 107   ;;  %vm738_vm5 = vcmask 359424   ;;  %vm3446_vm6 = vcmask 1022976  }
   0x4   :  { %26 = vst [vmem:[#allocation2] sm:$0xff] %v3435_v2  ;;  %s2018_s15 = smov 106   ;;  %s2019_s16 = smov 105   ;;  %vm3447_vm7 = vcmask 1014784   ;;  %vm3467_vm8 = vcmask 556032   ;;  %vm3450_vm9 = vcmask 883712  }
   0x5   :  { %27 = vst [vmem:[#allocation2 + $0x8] sm:$0xff] %v3435_v2  ;;  %s2020_s17 = smov 104   ;;  %s2021_s18 = smov 88   ;;  %vm3463_vm10 = vcmask 687104   ;;  %vm3461_vm11 = vcmask 875520   ;;  %vm3466_vm12 = vcmask 695296  }
   0x6   :  { %28 = vst [vmem:[#allocation2 + $0x10] sm:$0xff] %v3435_v2  ;;  %s2022_s19 = smov 44   ;;  %s2023_s20 = smov 47   ;;  %vm3475_vm13 = vcmask 867328   ;;  %vm3474_vm14 = vcmask 859136   ;;  %vm3476_vm15 = vcmask 850944  }
   0x7   :  { %29 = vst [vmem:[#allocation2 + $0x18] sm:$0xff] %v3435_v2  ;;  %s2024_s21 = smov 68   ;;  %s2025_s22 = smov 84  }
   0x8   :  { %s2026_s23 = smov 85   ;;  %s2027_s24 = smov 66  }
   0x9   :  { %v41_v3 = vld.sshfl [vmem:[#allocation1 + $0x10] sm:$0xff pattern:$0x75316420]  ;;  %v42_v5 = vld.sshfl [vmem:[#allocation1 + $0x18] sm:$0xff pattern:$0x75316420] }
   0xa   :  { %47 = vrot.lane.b32.xlu1 %v41_v3, %s2011_s9  ;;  %v39_v4 = vld.sshfl [vmem:[#allocation1] sm:$0xff pattern:$0x75316420]  ;;  %v40_v6 = vld.sshfl [vmem:[#allocation1 + $0x8] sm:$0xff pattern:$0x75316420] }
   0xb   :  { %43 = vrot.lane.b32.xlu0 %v39_v4, %s2011_s9  ;;  %s2028_s25 = smov 48   ;;  %s2029_s26 = smov 64  }
   0xc   :  { %s2030_s27 = smov 67   ;;  %s2031_s28 = smov 87  }
   0xd   :  { %s2032_s29 = smov 45   ;;  %s2033_s30 = smov 46  }
  0x12   :  { %49 = vrot.lane.b32.xlu1 %v42_v5, %s2011_s9 }
  0x13   :  { %45 = vrot.lane.b32.xlu0 %v40_v6, %s2011_s9  ;;  %s2034_s9 = smov 86  }
  0x1b   :  { %1612 = vrot.lane.b32.xlu0 %v3435_v2, %s2012_s0 }
  0x23   :  { %1617 = vrot.lane.b32.xlu0 %v3435_v2, %s2013_s10 }
  0x2b   :  { %1622 = vrot.lane.b32.xlu0 %v3435_v2, %s2014_s11 }
  0x33   :  { %1627 = vrot.lane.b32.xlu0 %v3435_v2, %s2015_s12 }
  0x3b   :  { %1632 = vrot.lane.b32.xlu0 %v3435_v2, %s2016_s13 }
  0x43   :  { %1637 = vrot.lane.b32.xlu0 %v3435_v2, %s2017_s14 }
  0x4b   :  { %1642 = vrot.lane.b32.xlu0 %v3435_v2, %s2018_s15 }
  0x53   :  { %1647 = vrot.lane.b32.xlu0 %v3435_v2, %s2019_s16 }
  0x5b   :  { %1652 = vrot.lane.b32.xlu0 %v3435_v2, %s2020_s17 }
  0x63   :  { %1657 = vrot.lane.b32.xlu0 %v3435_v2, %s2021_s18 }
  0x7c   :  { %v48_v7 = vpop.permute.xlu1 %47 }
  0x7d   :  { %v44_v8 = vpop.permute.xlu0 %43 }
  0x7e   :  { %60 = vst.msk [vmem:[#allocation2] sm:$0x7] %vm59_vm0, %v44_v8  ;;  %vm346_vm0 = vcmask 719872  }
  0x84   :  { %v50_v9 = vpop.permute.xlu1 %49 }
  0x85   :  { %v54_v10 = vsel %vm51_vm1, %v48_v7, %v50_v9  ;;  %v46_v11 = vpop.permute.xlu0 %45  ;;  %v2113_v14 = vld [vmem:[#allocation2] sm:$0xff] }
  0x86   :  { %64 = vst.msk [vmem:[#allocation2 + $0x18] sm:$0x7] %vm63_vm2, %v54_v10  ;;  %v52_v12 = vsel %vm51_vm1, %v44_v8, %v46_v11  ;;  %v53_v13 = vsel %vm51_vm1, %v46_v11, %v48_v7  ;;  %vm710_vm1 = vcmask 367616   ;;  %vm682_vm2 = vcmask 375808  }
  0x87   :  { %61 = vst [vmem:[#allocation2 + $0x8] sm:$0x7] %v52_v12 }
  0x88   :  { %62 = vst [vmem:[#allocation2 + $0x10] sm:$0x7] %v53_v13 }
  0x8d   :  { %v2127_v17 = vld [vmem:[#allocation2 + $0x18] sm:$0xff]  ;;  %v2145_v21 = vpop.permute.xlu0 %1612 }
  0x8e   :  { %v2115_v15 = vld [vmem:[#allocation2 + $0x8] sm:$0xff]  ;;  %3478 = vst [vmem:[#allocation6_spill] sm:$0xff] %v2145_v21  ;;  %v3383_v31 = vunpack.i.l.bf16 %v2145_v21  ;;  %v3424_v36 = vpack.i.bf16 0.0, %v2127_v17  ;;  %v2264_v43 = vpack.i.bf16 %v2127_v17, %v2113_v14 }
  0x8f   :  { %v2119_v16 = vpack.i.bf16 %v2115_v15, %v2113_v14  ;;  %v2129_v18 = vld [vmem:[#allocation2 + $0x10] sm:$0xff] }
  0x90   :  { %3477 = vst [vmem:[#allocation5_spill] sm:$0xff] %v2129_v18  ;;  %v2133_v19 = vpack.i.bf16 %v2127_v17, %v2129_v18  ;;  %v2143_v20 = vpack.i.bf16 %v2129_v18, %v2115_v15 }
  0x91   :  { %1772 = vrot.lane.b32.xlu0 %v2119_v16, %s2022_s19  ;;  %1672 = vrot.lane.b32.xlu1 %v2119_v16, %s2013_s10 }
  0x92   :  { %1662 = vrot.lane.b32.xlu2 %v2119_v16, %s2012_s0 }
  0x95   :  { %v2157_v22 = vpop.permute.xlu0 %1617 }
  0x96   :  { %3479 = vst [vmem:[#allocation7_spill] sm:$0xff] %v2157_v22  ;;  %v3384_v40 = vunpack.i.l.bf16 %v2157_v22 }
  0x99   :  { %1787 = vrot.lane.b32.xlu0 %v2119_v16, %s2023_s20  ;;  %1682 = vrot.lane.b32.xlu1 %v2119_v16, %s2014_s11 }
  0x9a   :  { %1667 = vrot.lane.b32.xlu2 %v2133_v19, %s2012_s0 }
  0x9d   :  { %v2167_v23 = vpop.permute.xlu0 %1622 }
  0x9e   :  { %3480 = vst [vmem:[#allocation8_spill] sm:$0xff] %v2167_v23  ;;  %v3385_v45 = vunpack.i.l.bf16 %v2167_v23 }
  0xa1   :  { %1802 = vrot.lane.b32.xlu0 %v2143_v20, %s2024_s21  ;;  %1692 = vrot.lane.b32.xlu1 %v2119_v16, %s2015_s12 }
  0xa2   :  { %1677 = vrot.lane.b32.xlu2 %v2133_v19, %s2013_s10 }
  0xa5   :  { %v2175_v24 = vpop.permute.xlu0 %1627 }
  0xa6   :  { %3481 = vst [vmem:[#allocation9_spill] sm:$0xff] %v2175_v24  ;;  %v3386_v57 = vunpack.i.l.bf16 %v2175_v24 }
  0xa9   :  { %1817 = vrot.lane.b32.xlu0 %v2143_v20, %s2025_s22  ;;  %1702 = vrot.lane.b32.xlu1 %v2119_v16, %s2016_s13 }
  0xaa   :  { %1687 = vrot.lane.b32.xlu2 %v2133_v19, %s2014_s11  ;;  %s2035_s11 = smov 65  }
  0xad   :  { %v2183_v25 = vpop.permute.xlu0 %1632 }
  0xae   :  { %3482 = vst [vmem:[#allocation10_spill] sm:$0xff] %v2183_v25  ;;  %v3387_v3 = vunpack.i.l.bf16 %v2183_v25 }
  0xb1   :  { %1832 = vrot.lane.b32.xlu0 %v2143_v20, %s2026_s23  ;;  %1712 = vrot.lane.b32.xlu1 %v2119_v16, %s2017_s14 }
  0xb2   :  { %1697 = vrot.lane.b32.xlu2 %v2133_v19, %s2015_s12 }
  0xb5   :  { %v2195_v26 = vpop.permute.xlu0 %1637 }
  0xb6   :  { %3483 = vst [vmem:[#allocation11_spill] sm:$0xff] %v2195_v26 }
  0xb9   :  { %1847 = vrot.lane.b32.xlu0 %v2119_v16, %s2027_s24  ;;  %1722 = vrot.lane.b32.xlu1 %v2119_v16, %s2018_s15 }
  0xba   :  { %1707 = vrot.lane.b32.xlu2 %v2133_v19, %s2016_s13 }
  0xbd   :  { %v2205_v27 = vpop.permute.xlu0 %1642 }
  0xbe   :  { %3484 = vst [vmem:[#allocation12_spill] sm:$0xff] %v2205_v27 }
  0xc1   :  { %1862 = vrot.lane.b32.xlu0 %v2133_v19, %s2028_s25  ;;  %1732 = vrot.lane.b32.xlu1 %v2119_v16, %s2019_s16 }
  0xc2   :  { %1717 = vrot.lane.b32.xlu2 %v2133_v19, %s2017_s14 }
  0xc5   :  { %v2213_v28 = vpop.permute.xlu0 %1647 }
  0xc6   :  { %3485 = vst [vmem:[#allocation13_spill] sm:$0xff] %v2213_v28 }
  0xc9   :  { %1877 = vrot.lane.b32.xlu0 %v2133_v19, %s2029_s26  ;;  %1742 = vrot.lane.b32.xlu1 %v2119_v16, %s2020_s17 }
  0xca   :  { %1727 = vrot.lane.b32.xlu2 %v2133_v19, %s2018_s15 }
  0xcd   :  { %v2222_v30 = vpop.permute.xlu0 %1652 }
  0xce   :  { %3486 = vst [vmem:[#allocation14_spill] sm:$0xff] %v2222_v30 }
  0xd1   :  { %1892 = vrot.lane.b32.xlu0 %v3435_v2, %s2024_s21  ;;  %1752 = vrot.lane.b32.xlu1 %v2119_v16, %s2021_s18 }
  0xd2   :  { %1737 = vrot.lane.b32.xlu2 %v2133_v19, %s2019_s16 }
  0xd5   :  { %v2254_v39 = vpop.permute.xlu0 %1657 }
  0xd6   :  { %3488 = vst [vmem:[#allocation16_spill] sm:$0xff] %v2254_v39 }
  0xd9   :  { %506 = vrot.lane.b32.xlu0 %v2129_v18, %s2030_s27  ;;  %1762 = vrot.lane.b32.xlu1 %v2119_v16, %s2031_s28 }
  0xda   :  { %1747 = vrot.lane.b32.xlu2 %v2133_v19, %s2020_s17 }
  0xe1   :  { %1912 = vrot.lane.b32.xlu0 %v3435_v2, %s2031_s28  ;;  %1777 = vrot.lane.b32.xlu1 %v2119_v16, %s2032_s29 }
  0xe2   :  { %1757 = vrot.lane.b32.xlu2 %v2133_v19, %s2021_s18 }
  0xe9   :  { %678 = vrot.lane.b32.xlu0 %v3435_v2, %s2033_s30  ;;  %1792 = vrot.lane.b32.xlu1 %v2133_v19, %s2022_s19 }
  0xea   :  { %1767 = vrot.lane.b32.xlu2 %v2133_v19, %s2031_s28 }
  0xec   :  { %v2220_v29 = vpop.permute.xlu2 %1662 }
  0xed   :  { %v3390_v33 = vunpack.i.h.bf16 %v2220_v29 }
  0xf1   :  { %594 = vrot.lane.b32.xlu0 %v3435_v2, %s2029_s26  ;;  %1807 = vrot.lane.b32.xlu1 %v2133_v19, %s2032_s29 }
  0xf2   :  { %1782 = vrot.lane.b32.xlu2 %v2119_v16, %s2033_s30 }
  0xf4   :  { %v2230_v32 = vpop.permute.xlu2 %1667 }
  0xf5   :  { %v3389_v34 = vunpack.i.h.bf16 %v2230_v32  ;;  %v3388_v35 = vunpack.i.l.bf16 %v2230_v32 }
  0xf7   :  { %v2241_v37 = vsel %vm3439_vm3, %v3390_v33, %v3388_v35  ;;  %v2248_v38 = vsel %vm3439_vm3, %v3389_v34, %v3383_v31  ;;  %vm654_vm3 = vcmask 384000  }
  0xf8   :  { %3487 = vst [vmem:[#allocation15_spill] sm:$0xff] %v2248_v38 }
  0xf9   :  { %1922 = vrot.lane.b32.xlu0 %v3424_v36, %s2030_s27  ;;  %1822 = vrot.lane.b32.xlu1 %v2133_v19, %s2033_s30 }
  0xfa   :  { %1797 = vrot.lane.b32.xlu2 %v2119_v16, %s2028_s25 }
  0xfc   :  { %v2259_v41 = vpop.permute.xlu2 %1677 }
  0xfd   :  { %v3392_v42 = vunpack.i.h.bf16 %v2259_v41  ;;  %v3391_v48 = vunpack.i.l.bf16 %v2259_v41 }
  0xff   :  { %v2271_v44 = vsel %vm3443_vm4, %v3392_v42, %v3384_v40 }
 0x100   :  { %3489 = vst [vmem:[#allocation17_spill] sm:$0xff] %v2271_v44 }
 0x101   :  { %680 = vrot.lane.b32.xlu0 %v3435_v2, %s2033_s30  ;;  %1837 = vrot.lane.b32.xlu1 %v2264_v43, %s2024_s21 }
 0x102   :  { %1812 = vrot.lane.b32.xlu2 %v2119_v16, %s2029_s26 }
 0x103   :  { %v2279_v46 = vpop.permute.xlu1 %1672  ;;  %v2281_v47 = vpop.permute.xlu0 %1772 }
 0x104   :  { %v3393_v49 = vunpack.i.h.bf16 %v2279_v46  ;;  %v2285_v50 = vpop.permute.xlu2 %1687  ;;  %v3411_v51 = vunpack.i.h.bf16 %v2281_v47  ;;  %v1774_v52 = vunpack.i.l.bf16 %v2281_v47 }
 0x105   :  { %v3396_v53 = vunpack.i.h.bf16 %v2285_v50  ;;  %v3394_v60 = vunpack.i.l.bf16 %v2285_v50 }
 0x106   :  { %v739_v54 = vsel %vm738_vm5, %v1774_v52, %v3411_v51  ;;  %v2298_v55 = vsel %vm3443_vm4, %v3393_v49, %v3391_v48  ;;  %v3405_v48 = vunpack.i.l.bf16 %v2205_v27  ;;  %vm626_vm4 = vcmask 392192  }
 0x107   :  { %918 = vmatpush.msra.mxu3 %v739_v54  ;;  %v2305_v56 = vsel %vm3446_vm6, %v3396_v53, %v3385_v45 }
 0x108   :  { %3490 = vst [vmem:[#allocation18_spill] sm:$0xff] %v2305_v56 }
 0x109   :  { %596 = vrot.lane.b32.xlu0 %v3435_v2, %s2029_s26  ;;  %1852 = vrot.lane.b32.xlu1 %v2143_v20, %s2034_s9  ;;  %v3395_v20 = vunpack.i.l.bf16 %v2195_v26 }
 0x10a   :  { %1827 = vrot.lane.b32.xlu2 %v2119_v16, %s2035_s11 }
 0x10b   :  { %v2314_v58 = vpop.permute.xlu1 %1682  ;;  %v2316_v59 = vpop.permute.xlu0 %1787 }
 0x10c   :  { %v3397_v61 = vunpack.i.h.bf16 %v2314_v58  ;;  %v2320_v62 = vpop.permute.xlu2 %1697  ;;  %v1789_v24 = vunpack.i.l.bf16 %v2316_v59 }
 0x10d   :  { %v3399_v63 = vunpack.i.h.bf16 %v2320_v62  ;;  %v3398_v6 = vunpack.i.l.bf16 %v2320_v62 }
 0x10e   :  { %v2328_v0 = vsel %vm3446_vm6, %v3397_v61, %v3394_v60  ;;  %vm598_vm6 = vcmask 523264  }
 0x10f   :  { %v2335_v1 = vsel %vm3447_vm7, %v3399_v63, %v3386_v57 }
 0x110   :  { %3491 = vst [vmem:[#allocation19_spill] sm:$0xff] %v2335_v1  ;;  %v3500_v1 = vmov 0.0  }
 0x111   :  { %512 = vrot.lane.b32.xlu0 %v3435_v2, %s2030_s27  ;;  %1867 = vrot.lane.b32.xlu1 %v2119_v16, %s2030_s27 }
 0x112   :  { %1842 = vrot.lane.b32.xlu2 %v2133_v19, %s2023_s20 }
 0x113   :  { %v2344_v4 = vpop.permute.xlu1 %1692  ;;  %v2346_v5 = vpop.permute.xlu0 %1802 }
 0x114   :  { %v3400_v7 = vunpack.i.h.bf16 %v2344_v4  ;;  %v2350_v8 = vpop.permute.xlu2 %1707  ;;  %v3422_v9 = vunpack.i.h.bf16 %v2346_v5  ;;  %v3423_v10 = vunpack.i.l.bf16 %v2346_v5 }
 0x115   :  { %v3402_v11 = vunpack.i.h.bf16 %v2350_v8 }
 0x116   :  { %v488_v12 = vsel %vm3467_vm8, %v3423_v10, %v3422_v9  ;;  %v2365_v13 = vsel %vm3447_vm7, %v3400_v7, %v3398_v6  ;;  %vm570_vm7 = vcmask 531456  }
 0x117   :  { %931 = vmatpush.msra.mxu2 %v488_v12  ;;  %v2372_v16 = vsel %vm3450_vm9, %v3402_v11, %v3387_v3  ;;  %v3401_v12 = vunpack.i.l.bf16 %v2350_v8 }
 0x118   :  { %3492 = vst [vmem:[#allocation20_spill] sm:$0xff] %v2372_v16 }
 0x119   :  { %1882 = vrot.lane.b32.xlu1 %v2264_v43, %s2034_s9 }
 0x11a   :  { %1857 = vrot.lane.b32.xlu2 %v2264_v43, %s2025_s22 }
 0x11b   :  { %v2379_v52 = vpop.permute.xlu1 %1702  ;;  %v2381_v54 = vpop.permute.xlu0 %1817 }
 0x11c   :  { %v3403_v31 = vunpack.i.h.bf16 %v2379_v52  ;;  %v2385_v40 = vpop.permute.xlu2 %1717  ;;  %v3416_v45 = vunpack.i.h.bf16 %v2381_v54  ;;  %v3419_v57 = vunpack.i.l.bf16 %v2381_v54 }
 0x11d   :  { %v3406_v3 = vunpack.i.h.bf16 %v2385_v40 }
 0x11e   :  { %v460_v35 = vsel %vm3463_vm10, %v3419_v57, %v3416_v45  ;;  %v2400_v34 = vsel %vm3450_vm9, %v3403_v31, %v3401_v12  ;;  %v3412_v12 = vunpack.i.l.bf16 %v2213_v28  ;;  %vm542_vm9 = vcmask 539648  }
 0x11f   :  { %932 = vmatpush.msra.mxu2 %v460_v35  ;;  %v2407_v33 = vsel %vm3461_vm11, %v3406_v3, %v3395_v20  ;;  %v3404_v35 = vunpack.i.l.bf16 %v2385_v40 }
 0x120   :  { %3493 = vst [vmem:[#allocation21_spill] sm:$0xff] %v2407_v33 }
 0x121   :  { %534 = vrot.lane.b32.xlu1 %v2129_v18, %s2027_s24  ;;  %v3508_v18 = vunpack.i.h.bf16 %v2381_v54 }
 0x122   :  { %1872 = vrot.lane.b32.xlu2 %v2264_v43, %s2026_s23 }
 0x123   :  { %v2414_v42 = vpop.permute.xlu1 %1712  ;;  %v2416_v49 = vpop.permute.xlu0 %1832 }
 0x124   :  { %v3407_v60 = vunpack.i.h.bf16 %v2414_v42  ;;  %v2420_v20 = vpop.permute.xlu2 %1727  ;;  %v3414_v53 = vunpack.i.h.bf16 %v2416_v49  ;;  %v3415_v61 = vunpack.i.l.bf16 %v2416_v49 }
 0x125   :  { %v3408_v43 = vunpack.i.h.bf16 %v2420_v20  ;;  %v3409_v31 = vunpack.i.l.bf16 %v2420_v20 }
 0x126   :  { %v432_v6 = vsel %vm3466_vm12, %v3415_v61, %v3414_v53  ;;  %v2435_v63 = vsel %vm3461_vm11, %v3407_v60, %v3404_v35  ;;  %v3420_v60 = vunpack.i.l.bf16 %v2222_v30  ;;  %v3426_v61 = vunpack.i.l.bf16 %v2254_v39 }
 0x127   :  { %933 = vmatpush.msra.mxu2 %v432_v6  ;;  %v2442_v7 = vsel %vm3475_vm13, %v3408_v43, %v3405_v48  ;;  %vm402_vm11 = vcmask 703488  }
 0x128   :  { %3494 = vst [vmem:[#allocation22_spill] sm:$0xff] %v2442_v7 }
 0x129   :  { %1902 = vrot.lane.b32.xlu1 %v3435_v2, %s2026_s23 }
 0x12a   :  { %1887 = vrot.lane.b32.xlu2 %v2133_v19, %s2035_s11 }
 0x12b   :  { %v2449_v11 = vpop.permute.xlu1 %1722 }
 0x12c   :  { %v3410_v6 = vunpack.i.h.bf16 %v2449_v11  ;;  %v2453_v35 = vpop.permute.xlu2 %1737 }
 0x12d   :  { %v3413_v48 = vunpack.i.h.bf16 %v2453_v35 }
 0x12e   :  { %v2461_v3 = vsel %vm3475_vm13, %v3410_v6, %v3409_v31  ;;  %v3417_v31 = vunpack.i.l.bf16 %v2453_v35 }
 0x12f   :  { %v2468_v19 = vsel %vm3474_vm14, %v3413_v48, %v3412_v12 }
 0x130   :  { %3495 = vst [vmem:[#allocation23_spill] sm:$0xff] %v2468_v19 }
 0x131   :  { %734 = vrot.lane.b32.xlu1 %v3435_v2, %s2022_s19 }
 0x132   :  { %1897 = vrot.lane.b32.xlu2 %v3435_v2, %s2025_s22 }
 0x133   :  { %v2475_v43 = vpop.permute.xlu1 %1732 }
 0x134   :  { %v3418_v6 = vunpack.i.h.bf16 %v2475_v43  ;;  %v2479_v51 = vpop.permute.xlu2 %1747 }
 0x135   :  { %v3421_v12 = vunpack.i.h.bf16 %v2479_v51 }
 0x136   :  { %v2487_v48 = vsel %vm3474_vm14, %v3418_v6, %v3417_v31  ;;  %v3425_v31 = vunpack.i.l.bf16 %v2479_v51 }
 0x137   :  { %v2494_v53 = vsel %vm3476_vm15, %v3421_v12, %v3420_v60 }
 0x138   :  { %3496 = vst [vmem:[#allocation24_spill] sm:$0xff] %v2494_v53  ;;  %v3506_v53 = vunpack.i.l.bf16 %v2381_v54 }
 0x139   :  { %650 = vrot.lane.b32.xlu1 %v3435_v2, %s2023_s20 }
 0x13a   :  { %1907 = vrot.lane.b32.xlu2 %v3435_v2, %s2034_s9 }
 0x13b   :  { %v2501_v45 = vpop.permute.xlu1 %1742 }
 0x13c   :  { %v3427_v6 = vunpack.i.h.bf16 %v2501_v45  ;;  %v2505_v57 = vpop.permute.xlu2 %1757 }
 0x13d   :  { %v3428_v60 = vunpack.i.h.bf16 %v2505_v57 }
 0x13e   :  { %v2513_v12 = vsel %vm3476_vm15, %v3427_v6, %v3425_v31  ;;  %v3498_v6 = vpack.i.bf16 0.0, %v2127_v17 }
 0x13f   :  { %v2520_v9 = vsel %vm346_vm0, %v3428_v60, %v3426_v61 }
 0x140   :  { %3497 = vst [vmem:[#allocation25_spill] sm:$0xff] %v2520_v9 }
 0x141   :  { %566 = vrot.lane.b32.xlu1 %v3435_v2, %s2035_s11 }
 0x142   :  { %706 = vrot.lane.b32.xlu2 %v3435_v2, %s2032_s29 }
 0x143   :  { %v2526_v10 = vpop.permute.xlu1 %1752 }
 0x144   :  { %v2528_v36 = vpop.permute.xlu2 %1767 }
 0x149   :  { %736 = vrot.lane.b32.xlu1 %v3435_v2, %s2022_s19 }
 0x14a   :  { %622 = vrot.lane.b32.xlu2 %v3435_v2, %s2028_s25 }
 0x14b   :  { %v2534_v31 = vpop.permute.xlu1 %1762 }
 0x14c   :  { %v2536_v61 = vpop.permute.xlu2 %1782  ;;  %v3511_v54 = vunpack.i.h.bf16 %v2534_v31 }
 0x14d   :  { %v1784_v22 = vunpack.i.l.bf16 %v2536_v61  ;;  %v3499_v56 = vunpack.i.h.bf16 %v2536_v61 }
 0x14f   :  { %v683_v25 = vsel %vm682_vm2, %v1784_v22, %v3499_v56 }
 0x151   :  { %652 = vrot.lane.b32.xlu1 %v3435_v2, %s2023_s20  ;;  %v2563_v2 = vpop.permute.xlu0 %1847 }
 0x152   :  { %1917 = vrot.lane.b32.xlu2 %v3498_v6, %s2027_s24 }
 0x153   :  { %v2543_v60 = vpop.permute.xlu1 %1777 }
 0x154   :  { %v3442_v38 = vunpack.i.h.bf16 %v2543_v60  ;;  %v1779_v23 = vunpack.i.l.bf16 %v2543_v60  ;;  %v2549_v44 = vpop.permute.xlu2 %1797 }
 0x155   :  { %v1799_v21 = vunpack.i.l.bf16 %v2549_v44  ;;  %v3502_v22 = vunpack.i.h.bf16 %v2549_v44 }
 0x156   :  { %v711_v17 = vsel %vm710_vm1, %v1779_v23, %v3442_v38  ;;  %v3501_v23 = vunpack.i.h.bf16 %v2316_v59 }
 0x157   :  { %919 = vmatpush.msra.mxu3 %v711_v17  ;;  %v627_v56 = vsel %vm626_vm4, %v1799_v21, %v3502_v22  ;;  %v3456_v21 = vunpack.i.h.bf16 %v2563_v2  ;;  %v1849_v22 = vunpack.i.l.bf16 %v2563_v2 }
 0x158   :  { %v655_v17 = vsel %vm654_vm3, %v1789_v24, %v3501_v23 }
 0x159   :  { %568 = vrot.lane.b32.xlu1 %v3500_v1, %s2035_s11  ;;  %920 = vmatpush.msra.mxu3 %v683_v25 }
 0x15a   :  { %708 = vrot.lane.b32.xlu2 %v3500_v1, %s2032_s29 }
 0x15b   :  { %v2570_v38 = vpop.permute.xlu1 %1792  ;;  %921 = vmatpush.msra.mxu3 %v655_v17  ;;  %v2586_v17 = vpop.permute.xlu0 %1862 }
 0x15c   :  { %v2572_v6 = vpop.permute.xlu2 %1812 }
 0x15d   :  { %v3451_v25 = vunpack.i.h.bf16 %v2572_v6  ;;  %v1814_v26 = vunpack.i.l.bf16 %v2572_v6  ;;  %922 = vmatpush.msra.mxu3 %v627_v56 }
 0x15f   :  { %v599_v24 = vsel %vm598_vm6, %v1814_v26, %v3451_v25 }
 0x160   :  { %923 = vmatpush.msra.mxu3 %v599_v24  ;;  %v543_v24 = vsel %vm542_vm9, %v1849_v22, %v3456_v21 }
 0x162   :  { %624 = vrot.lane.b32.xlu2 %v3500_v1, %s2028_s25 }
 0x163   :  { %v2584_v23 = vpop.permute.xlu1 %1807  ;;  %v2606_v28 = vpop.permute.xlu0 %1877 }
 0x164   :  { %v2588_v16 = vpop.permute.xlu2 %1827 }
 0x165   :  { %v3457_v56 = vunpack.i.h.bf16 %v2588_v16  ;;  %v1829_v27 = vunpack.i.l.bf16 %v2588_v16 }
 0x167   :  { %v571_v26 = vsel %vm570_vm7, %v1829_v27, %v3457_v56  ;;  %v3505_v56 = vunpack.i.h.bf16 %v2346_v5 }
 0x168   :  { %924 = vmatpush.msra.mxu3 %v571_v26 }
 0x16a   :  { %540 = vrot.lane.b32.xlu2 %v3500_v1, %s2027_s24  ;;  %925 = vmatpush.msra.mxu3 %v543_v24  ;;  %v3504_v1 = vunpack.i.l.bf16 %v2346_v5  ;;  %v3468_v5 = vunpack.i.l.bf16 %v2505_v57 }
 0x16b   :  { %v2602_v25 = vpop.permute.xlu1 %1822  ;;  %v2624_v39 = vpop.permute.xlu0 %1892 }
 0x16c   :  { %v2604_v33 = vpop.permute.xlu2 %1842 }
 0x173   :  { %v2608_v7 = vpop.permute.xlu1 %1837 }
 0x174   :  { %v3462_v30 = vunpack.i.h.bf16 %v2608_v7  ;;  %v1839_v27 = vunpack.i.l.bf16 %v2608_v7  ;;  %v2612_v26 = vpop.permute.xlu2 %1857 }
 0x175   :  { %3503 = vst [vmem:[#allocation26_spill] sm:$0xff] %v2612_v26  ;;  %v1859_v21 = vunpack.i.l.bf16 %v2612_v26  ;;  %v3507_v9 = vunpack.i.h.bf16 %v2612_v26 }
 0x176   :  { %v487_v24 = vsel %vm3467_vm8, %v1839_v27, %v3504_v1  ;;  %v489_v19 = vsel %vm3467_vm8, %v3505_v56, %v3462_v30  ;;  %vm887_vm8 = vcmask 588800  }
 0x177   :  { %891 = vmatpush.msra.mxu0 %v487_v24  ;;  %971 = vmatpush.msra.mxu1 %v489_v19  ;;  %v459_v22 = vsel %vm3463_vm10, %v1859_v21, %v3506_v53  ;;  %v461_v27 = vsel %vm3463_vm10, %v3508_v18, %v3507_v9  ;;  %v3470_v18 = vunpack.i.l.bf16 %v2528_v36  ;;  %vm374_vm10 = vcmask 711680  }
 0x179   :  { %892 = vmatpush.msra.mxu0 %v459_v22  ;;  %972 = vmatpush.msra.mxu1 %v461_v27  ;;  %v3509_v22 = vunpack.i.l.bf16 %v2416_v49  ;;  %v376_v26 = vsel %vm374_vm10, %v3511_v54, %v3470_v18 }
 0x17b   :  { %v2634_v1 = vpop.permute.xlu1 %1852 }
 0x17c   :  { %v1855_v19 = vunpack.i.h.bf16 %v2634_v1  ;;  %v1854_v56 = vunpack.i.l.bf16 %v2634_v1  ;;  %v2639_v24 = vpop.permute.xlu2 %1872  ;;  %v3510_v1 = vunpack.i.h.bf16 %v2416_v49  ;;  %v3512_v49 = vunpack.i.h.bf16 %v2526_v10 }
 0x17d   :  { %v3465_v53 = vunpack.i.h.bf16 %v2639_v24  ;;  %v1874_v21 = vunpack.i.l.bf16 %v2639_v24 }
 0x17e   :  { %v404_v9 = vsel %vm402_vm11, %v1854_v56, %v1855_v19 }
 0x17f   :  { %v431_v27 = vsel %vm3466_vm12, %v1874_v21, %v3509_v22  ;;  %934 = vmatpush.msra.mxu2 %v404_v9  ;;  %v433_v30 = vsel %vm3466_vm12, %v3510_v1, %v3465_v53  ;;  %v2660_v21 = vpop.permute.xlu0 %506  ;;  %v348_v9 = vsel %vm346_vm0, %v3512_v49, %v3468_v5  ;;  %v3473_v22 = vunpack.i.l.bf16 %v2570_v38  ;;  %v2682_v49 = vld [vmem:[%s3375_s1 + $0x8] sm:$0xff] }
 0x180   :  { %893 = vmatpush.msra.mxu0 %v431_v27  ;;  %973 = vmatpush.msra.mxu1 %v433_v30  ;;  %vm514_vm12 = vcmask 547840  }
 0x181   :  { %935 = vmatpush.msra.mxu2 %v376_v26  ;;  %v3472_v26 = vunpack.i.l.bf16 %v2584_v23 }
 0x183   :  { %v2668_v1 = vpop.permute.xlu1 %1867  ;;  %936 = vmatpush.msra.mxu2 %v348_v9  ;;  %v3471_v9 = vunpack.i.l.bf16 %v2602_v25 }
 0x184   :  { %v3469_v30 = vunpack.i.h.bf16 %v2668_v1  ;;  %v1869_v27 = vunpack.i.l.bf16 %v2668_v1  ;;  %v2672_v53 = vpop.permute.xlu2 %1887 }
 0x185   :  { %937 = vmatpush.msra.mxu2 %v2513_v12  ;;  %v3513_v12 = vunpack.i.h.bf16 %v2281_v47  ;;  %v3515_v47 = vunpack.i.h.bf16 %v2536_v61  ;;  %v3516_v61 = vunpack.i.h.bf16 %v2316_v59 }
 0x186   :  { %v515_v54 = vsel %vm514_vm12, %v1869_v27, %v3469_v30  ;;  %v1844_v27 = vunpack.i.l.bf16 %v2604_v33  ;;  %v3514_v30 = vunpack.i.h.bf16 %v2543_v60 }
 0x187   :  { %926 = vmatpush.msra.mxu3 %v515_v54  ;;  %938 = vmatpush.msra.mxu2 %v2487_v48  ;;  %v740_v5 = vsel %vm738_vm5, %v3513_v12, %v3473_v22  ;;  %v2709_v54 = vpop.permute.xlu0 %1912  ;;  %v1879_v22 = vunpack.i.l.bf16 %v2606_v28 }
 0x188   :  { %v712_v18 = vsel %vm710_vm1, %v3514_v30, %v3472_v26  ;;  %1562 = vmatmul.msk.f32.vlgmr.msra.gmra.mxu3 %vm887_vm8, %v2682_v49 }
 0x189   :  { %958 = vmatpush.msrb.mxu3 %v740_v5  ;;  %939 = vmatpush.msra.mxu2 %v2461_v3  ;;  %v684_v3 = vsel %vm682_vm2, %v3515_v47, %v3471_v9  ;;  %v1764_v5 = vunpack.i.l.bf16 %v2534_v31  ;;  %v656_v47 = vsel %vm654_vm3, %v3516_v61, %v1844_v27  ;;  %v1754_v9 = vunpack.i.l.bf16 %v2526_v10 }
 0x18a   :  { %v1744_v61 = vunpack.i.l.bf16 %v2501_v45 }
 0x18b   :  { %959 = vmatpush.msrb.mxu3 %v712_v18  ;;  %v2700_v48 = vpop.permute.xlu1 %1882  ;;  %940 = vmatpush.msra.mxu2 %v2435_v63  ;;  %v1864_v18 = vunpack.i.l.bf16 %v2586_v17  ;;  %v1889_v63 = vunpack.i.l.bf16 %v2672_v53 }
 0x18c   :  { %v1885_v60 = vunpack.i.h.bf16 %v2700_v48  ;;  %v1884_v30 = vunpack.i.l.bf16 %v2700_v48  ;;  %v2713_v12 = vpop.permute.xlu2 %1897 }
 0x18d   :  { %960 = vmatpush.msrb.mxu3 %v684_v3  ;;  %941 = vmatpush.msra.mxu2 %v2400_v34  ;;  %v3517_v34 = vunpack.i.h.bf16 %v2549_v44  ;;  %v3521_v44 = vunpack.i.h.bf16 %v2572_v6 }
 0x18e   :  { %v403_v26 = vsel %vm402_vm11, %v1884_v30, %v1854_v56  ;;  %v405_v3 = vsel %vm402_vm11, %v1855_v19, %v1885_v60  ;;  %v3518_v56 = vunpack.i.h.bf16 %v2534_v31  ;;  %v3522_v31 = vunpack.i.h.bf16 %v2526_v10 }
 0x18f   :  { %961 = vmatpush.msrb.mxu3 %v656_v47  ;;  %894 = vmatpush.msra.mxu0 %v403_v26  ;;  %v628_v59 = vsel %vm626_vm4, %v3517_v34, %v1864_v18  ;;  %v3519_v26 = vunpack.i.h.bf16 %v2528_v36  ;;  %v600_v47 = vsel %vm598_vm6, %v3521_v44, %v1879_v22  ;;  %v3523_v34 = vunpack.i.h.bf16 %v2505_v57 }
 0x190   :  { %942 = vmatpush.msra.mxu2 %v2365_v13  ;;  %974 = vmatpush.msra.mxu1 %v405_v3  ;;  %v375_v19 = vsel %vm374_vm10, %v1764_v5, %v3518_v56  ;;  %v3520_v13 = vunpack.i.l.bf16 %v2528_v36  ;;  %v1734_v3 = vunpack.i.l.bf16 %v2475_v43  ;;  %v3525_v56 = vunpack.i.h.bf16 %v2588_v16 }
 0x191   :  { %962 = vmatpush.msrb.mxu3 %v628_v59  ;;  %895 = vmatpush.msra.mxu0 %v375_v19  ;;  %v3524_v59 = vunpack.i.l.bf16 %v2505_v57  ;;  %v1724_v10 = vunpack.i.l.bf16 %v2449_v11  ;;  %v3528_v16 = vunpack.i.h.bf16 %v2479_v51  ;;  %v3529_v44 = vunpack.i.l.bf16 %v2479_v51 }
 0x192   :  { %943 = vmatpush.msra.mxu2 %v2328_v0  ;;  %v377_v30 = vsel %vm374_vm10, %v3520_v13, %v3519_v26  ;;  %v347_v0 = vsel %vm346_vm0, %v1754_v9, %v3522_v31  ;;  %v572_v19 = vsel %vm570_vm7, %v3525_v56, %v1889_v63  ;;  %v1795_v9 = vunpack.i.h.bf16 %v2570_v38 }
 0x193   :  { %975 = vmatpush.msra.mxu1 %v377_v30  ;;  %963 = vmatpush.msrb.mxu3 %v600_v47  ;;  %v2755_v5 = vpop.permute.xlu1 %534  ;;  %v349_v6 = vsel %vm346_vm0, %v3524_v59, %v3523_v34  ;;  %v3527_v13 = vunpack.i.h.bf16 %v2563_v2  ;;  %v321_v47 = vsel %vm3476_vm15, %v3529_v44, %v3528_v16  ;;  %v1714_v31 = vunpack.i.l.bf16 %v2414_v42 }
 0x194   :  { %896 = vmatpush.msra.mxu0 %v347_v0  ;;  %944 = vmatpush.msra.mxu2 %v2298_v55  ;;  %v2770_v26 = vpop.permute.xlu2 %1907  ;;  %v3526_v55 = vunpack.i.h.bf16 %v2501_v45  ;;  %v2786_v0 = vpop.permute.xlu0 %678  ;;  %v1810_v45 = vunpack.i.h.bf16 %v2584_v23  ;;  %v3530_v2 = vunpack.i.h.bf16 %v2475_v43  ;;  %v3532_v51 = vunpack.i.l.bf16 %v2453_v35  ;;  %v2805_v43 = vld [vmem:[%s3375_s1] sm:$0xff] }
 0x195   :  { %976 = vmatpush.msra.mxu1 %v349_v6  ;;  %964 = vmatpush.msrb.mxu3 %v572_v19  ;;  %v544_v30 = vsel %vm542_vm9, %v3527_v13, %v2755_v5  ;;  %v3533_v59 = vunpack.i.h.bf16 %v2668_v1  ;;  %v3535_v1 = vunpack.i.l.bf16 %v2570_v38  ;;  %v3540_v44 = vunpack.i.l.bf16 %v2584_v23 }
 0x196   :  { %v319_v57 = vsel %vm3476_vm15, %v1744_v61, %v3526_v55  ;;  %945 = vmatpush.msra.mxu2 %v2241_v37  ;;  %v291_v61 = vsel %vm3474_vm14, %v1734_v3, %v3530_v2  ;;  %v3531_v37 = vunpack.i.h.bf16 %v2453_v35  ;;  %v1704_v3 = vunpack.i.l.bf16 %v2379_v52 }
 0x197   :  { %897 = vmatpush.msra.mxu0 %v319_v57  ;;  %977 = vmatpush.msra.mxu1 %v321_v47  ;;  %v516_v6 = vsel %vm514_vm12, %v3533_v59, %v2660_v21  ;;  %v3534_v35 = vunpack.i.h.bf16 %v2449_v11  ;;  %v741_v19 = vsel %vm738_vm5, %v3535_v1, %v1795_v9  ;;  %v3536_v55 = vunpack.i.h.bf16 %v2420_v20 }
 0x198   :  { %965 = vmatpush.msrb.mxu3 %v544_v30  ;;  %946 = vmatpush.msra.mxu2 %v2115_v15  ;;  %v293_v34 = vsel %vm3474_vm14, %v3532_v51, %v3531_v37  ;;  %v1825_v15 = vunpack.i.h.bf16 %v2602_v25  ;;  %v3537_v57 = vunpack.i.l.bf16 %v2420_v20  ;;  %v1694_v30 = vunpack.i.l.bf16 %v2344_v4 }
 0x199   :  { %898 = vmatpush.msra.mxu0 %v291_v61  ;;  %978 = vmatpush.msra.mxu1 %v293_v34  ;;  %v263_v56 = vsel %vm3475_vm13, %v1724_v10, %v3534_v35  ;;  %v1845_v11 = vunpack.i.h.bf16 %v2604_v33  ;;  %v3538_v10 = vunpack.i.h.bf16 %v2414_v42  ;;  %vm3539_vm14 = vcmask 875520  }
 0x19a   :  { %966 = vmatpush.msrb.mxu3 %v516_v6  ;;  %v265_v13 = vsel %vm3475_vm13, %v3537_v57, %v3536_v55  ;;  %v713_v47 = vsel %vm710_vm1, %v3540_v44, %v1810_v45  ;;  %947 = vmatmul.f32.vlgmr.msra.gmra.mxu2 %v2805_v43  ;;  %v3541_v2 = vunpack.i.h.bf16 %v2385_v40  ;;  %v3542_v61 = vunpack.i.l.bf16 %v2385_v40  ;;  %vm3543_vm13 = vmmov %vm3539_vm14 }
 0x19b   :  { %899 = vmatpush.msra.mxu0 %v263_v56  ;;  %979 = vmatpush.msra.mxu1 %v265_v13  ;;  %v235_v16 = vsel %vm3539_vm14, %v1714_v31, %v3538_v10  ;;  %v2833_v20 = vpop.permute.xlu1 %1902  ;;  %v1684_v42 = vunpack.i.l.bf16 %v2314_v58  ;;  %v1865_v31 = vunpack.i.h.bf16 %v2586_v17  ;;  %v3544_v34 = vunpack.i.h.bf16 %v2379_v52  ;;  %v881_v52 = vld [vmem:[%s3376_s2] sm:$0xff] }
 0x19c   :  { %998 = vmatpush.msra.mxu3 %v741_v19  ;;  %v237_v37 = vsel %vm3543_vm13, %v3542_v61, %v3541_v2  ;;  %v2842_v51 = vpop.permute.xlu2 %706  ;;  %vm3545_vm14 = vcmask 883712   ;;  %v3546_v6 = vunpack.i.l.bf16 %v2602_v25  ;;  %v3547_v35 = vunpack.i.h.bf16 %v2350_v8 }
 0x19d   :  { %900 = vmatpush.msra.mxu0 %v235_v16  ;;  %980 = vmatpush.msra.mxu1 %v237_v37  ;;  %v207_v59 = vsel %vm3545_vm14, %v1704_v3, %v3544_v34  ;;  %v3548_v56 = vunpack.i.l.bf16 %v2350_v8  ;;  %vm3549_vm13 = vmmov %vm3545_vm14  ;;  %v1674_v3 = vunpack.i.l.bf16 %v2279_v46  ;;  %v1880_v19 = vunpack.i.h.bf16 %v2606_v28 }
 0x19e   :  { %999 = vmatpush.msra.mxu3 %v713_v47  ;;  %v685_v40 = vsel %vm682_vm2, %v3546_v6, %v1825_v15  ;;  %v3550_v55 = vunpack.i.h.bf16 %v2344_v4  ;;  %vm3551_vm14 = vcmask 1014784   ;;  %v657_v8 = vsel %vm654_vm3, %v1844_v27, %v1845_v11  ;;  %v2878_v47 = vpop.permute.xlu0 %594 }
 0x19f   :  { %1563 = vmatmul.msk.f32.vlgmr.msrb.gmra.mxu3 %vm887_vm8, %v2682_v49  ;;  %901 = vmatpush.msra.mxu0 %v207_v59  ;;  %v209_v1 = vsel %vm3549_vm13, %v3548_v56, %v3547_v35  ;;  %v2036_v13 = vmov 0   ;;  %v3552_v10 = vunpack.i.h.bf16 %v2320_v62  ;;  %v3553_v16 = vunpack.i.l.bf16 %v2320_v62  ;;  %vm3554_vm13 = vmmov %vm3551_vm14 }
 0x1a0   :  { %1000 = vmatpush.msra.mxu3 %v685_v40  ;;  %981 = vmatpush.msra.mxu1 %v209_v1  ;;  %v179_v57 = vsel %vm3551_vm14, %v1694_v30, %v3550_v55  ;;  %v1664_v4 = vunpack.i.l.bf16 %v2220_v29  ;;  %v1890_v30 = vunpack.i.h.bf16 %v2672_v53  ;;  %v3555_v2 = vunpack.i.h.bf16 %v2314_v58  ;;  %v3582_v53 = vld [vmem:[#allocation23_spill] sm:$0xff] }
 0x1a1   :  { %1926 = vset.pattern.permute.xlu1 %v2036_v13  ;;  %902 = vmatpush.msra.mxu0 %v179_v57  ;;  %v181_v44 = vsel %vm3554_vm13, %v3553_v16, %v3552_v10  ;;  %vm3556_vm14 = vcmask 1022976   ;;  %v629_v62 = vsel %vm626_vm4, %v1864_v18, %v1865_v31  ;;  %v3557_v61 = vunpack.i.h.bf16 %v2285_v50 }
 0x1a2   :  { %1001 = vmatpush.msra.mxu3 %v657_v8  ;;  %982 = vmatpush.msra.mxu1 %v181_v44  ;;  %v151_v27 = vsel %vm3556_vm14, %v1684_v42, %v3555_v2  ;;  %v3558_v37 = vunpack.i.l.bf16 %v2285_v50  ;;  %vm3559_vm13 = vmmov %vm3556_vm14  ;;  %v3560_v58 = vunpack.i.h.bf16 %v2279_v46  ;;  %vm3561_vm15 = vcmask 1031168   ;;  %v3573_v8 = vld [vmem:[#allocation26_spill] sm:$0xff] }
 0x1a3   :  { %884 = vperm.xlu1 %1926, %v881_v52   ;;  %903 = vmatpush.msra.mxu0 %v151_v27  ;;  %v601_v18 = vsel %vm598_vm6, %v1879_v22, %v1880_v19  ;;  %v2902_v59 = vpop.permute.xlu1 %734  ;;  %v3562_v50 = vunpack.i.h.bf16 %v2259_v41  ;;  %v3563_v6 = vunpack.i.l.bf16 %v2259_v41  ;;  %vm3564_vm14 = vmmov %vm3561_vm15  ;;  %v3565_v35 = vunpack.i.h.bf16 %v2220_v29 }
 0x1a4   :  { %v153_v34 = vsel %vm3559_vm13, %v3558_v37, %v3557_v61  ;;  %1002 = vmatpush.msra.mxu3 %v629_v62  ;;  %v123_v42 = vsel %vm3561_vm15, %v1674_v3, %v3560_v58  ;;  %2007 = vset.pattern.permute.xlu0 %v2036_v13  ;;  %v2909_v46 = vpop.permute.xlu2 %622  ;;  %vm3566_vm15 = vcmask 1039360   ;;  %v573_v22 = vsel %vm570_vm7, %v1889_v63, %v1890_v30  ;;  %v3570_v63 = vld [vmem:[#allocation5_spill] sm:$0xff]  ;;  %v3580_v58 = vld [vmem:[#allocation24_spill] sm:$0xff] }
 0x1a5   :  { %983 = vmatpush.msra.mxu1 %v153_v34  ;;  %904 = vmatpush.msra.mxu0 %v123_v42  ;;  %v125_v40 = vsel %vm3564_vm14, %v3563_v6, %v3562_v50  ;;  %v95_v56 = vsel %vm3566_vm15, %v1664_v4, %v3565_v35  ;;  %v742_v41 = vsel %vm738_vm5, %v1795_v9, %v2902_v59  ;;  %v1894_v1 = vunpack.i.l.bf16 %v2624_v39  ;;  %vm3569_vm13 = vmmov %vm3566_vm15  ;;  %v3579_v37 = vld [vmem:[#allocation25_spill] sm:$0xff]  ;;  %v3581_v50 = vld [vmem:[#allocation16_spill] sm:$0xff] }
 0x1a6   :  { %1003 = vmatpush.msra.mxu3 %v601_v18  ;;  %v3567_v52 = vunpack.i.h.bf16 %v2230_v32  ;;  %v3568_v29 = vunpack.i.l.bf16 %v2230_v32  ;;  %1038 = vmatpush.msrb.mxu2 %v742_v41  ;;  %v1899_v55 = vunpack.i.l.bf16 %v2713_v12  ;;  %v714_v38 = vsel %vm710_vm1, %v1810_v45, %v2842_v51  ;;  %v2946_v23 = vpop.permute.xlu0 %1922  ;;  %v3583_v35 = vld [vmem:[#allocation14_spill] sm:$0xff] }
 0x1a7   :  { %984 = vmatpush.msra.mxu1 %v125_v40  ;;  %905 = vmatpush.msra.mxu0 %v95_v56  ;;  %v1904_v9 = vunpack.i.l.bf16 %v2833_v20  ;;  %v3571_v32 = vunpack.i.h.bf16 %v2608_v7  ;;  %vm3572_vm14 = vcmask 556032   ;;  %v1909_v45 = vunpack.i.l.bf16 %v2770_v26 }
 0x1a8   :  { %v97_v3 = vsel %vm3569_vm13, %v3568_v29, %v3567_v52  ;;  %1004 = vmatpush.msra.mxu3 %v573_v22  ;;  %1039 = vmatpush.msrb.mxu2 %v714_v38  ;;  %v3574_v13 = vunpack.i.h.bf16 %v3573_v8  ;;  %vm3575_vm15 = vcmask 687104   ;;  %v1924_v44 = vunpack.i.l.bf16 %v2946_v23  ;;  %v3584_v22 = vld [vmem:[#allocation22_spill] sm:$0xff]  ;;  %v3585_v52 = vld [vmem:[#allocation13_spill] sm:$0xff] }
 0x1a9   :  { %985 = vmatpush.msra.mxu1 %v97_v3  ;;  %906 = vmatpush.msra.mxu0 %v2113_v14  ;;  %v490_v57 = vsel %vm3572_vm14, %v3571_v32, %v1894_v1  ;;  %v686_v14 = vsel %vm682_vm2, %v1825_v15, %v2786_v0  ;;  %v1914_v15 = vunpack.i.l.bf16 %v2709_v54  ;;  %v3576_v2 = vunpack.i.h.bf16 %v2639_v24  ;;  %v3586_v3 = vld [vmem:[#allocation21_spill] sm:$0xff] }
 0x1aa   :  { %907 = vmatmul.f32.vlgmr.msra.gmra.mxu0 %v2805_v43  ;;  %1040 = vmatpush.msrb.mxu2 %v686_v14  ;;  %v462_v10 = vsel %vm3575_vm15, %v3574_v13, %v1899_v55  ;;  %vm3577_vm13 = vcmask 695296   ;;  %v1895_v62 = vunpack.i.h.bf16 %v2624_v39  ;;  %v630_v33 = vsel %vm626_vm4, %v1865_v31, %v2909_v46  ;;  %v3592_v13 = vld [vmem:[#allocation11_spill] sm:$0xff] }
 0x1ab   :  { %986 = vmatpush.msra.mxu1 %v3570_v63  ;;  %1011 = vmatpush.msrb.mxu0 %v490_v57  ;;  %v2952_v7 = vpop.permute.xlu1 %650  ;;  %v434_v27 = vsel %vm3577_vm13, %v3576_v2, %v1904_v9  ;;  %v1900_v24 = vunpack.i.h.bf16 %v2713_v12  ;;  %v602_v39 = vsel %vm598_vm6, %v1880_v19, %v2878_v47  ;;  %v3578_v17 = vunpack.i.h.bf16 %v2528_v36  ;;  %v3589_v57 = vld [vmem:[#allocation20_spill] sm:$0xff]  ;;  %v3596_v2 = vld [vmem:[#allocation10_spill] sm:$0xff] }
 0x1ac   :  { %987 = vmatmul.f32.vlgmr.msra.gmra.mxu1 %v2805_v43  ;;  %v2954_v16 = vpop.permute.xlu2 %1917  ;;  %v658_v25 = vsel %vm654_vm3, %v1845_v11, %v2952_v7  ;;  %v406_v11 = vsel %vm402_vm11, %v1885_v60, %v1909_v45  ;;  %v517_v48 = vsel %vm514_vm12, %v2660_v21, %v1924_v44  ;;  %v1905_v60 = vunpack.i.h.bf16 %v2833_v20 }
 0x1ad   :  { %1012 = vmatpush.msrb.mxu0 %v462_v10  ;;  %v1919_v4 = vunpack.i.l.bf16 %v2954_v16  ;;  %1041 = vmatpush.msrb.mxu2 %v658_v25  ;;  %v378_v31 = vsel %vm374_vm10, %v3578_v17, %v1914_v15  ;;  %v491_v12 = vsel %vm3572_vm14, %v1894_v1, %v1895_v62  ;;  %v1925_v19 = vunpack.i.h.bf16 %v2946_v23  ;;  %v3593_v25 = vld [vmem:[#allocation19_spill] sm:$0xff]  ;;  %v3597_v62 = vld [vmem:[#allocation18_spill] sm:$0xff]  ;;  %v3601_v17 = vld [vmem:[#allocation17_spill] sm:$0xff] }
 0x1ae   :  { %v1910_v36 = vunpack.i.h.bf16 %v2770_v26  ;;  %v463_v21 = vsel %vm3575_vm15, %v1899_v55, %v1900_v24  ;;  %v1915_v34 = vunpack.i.h.bf16 %v2709_v54  ;;  %v435_v26 = vsel %vm3577_vm13, %v1904_v9, %v1905_v60  ;;  %v681_v40 = vpop.permute.xlu0 %680  ;;  %v3588_v9 = vld [vmem:[#allocation12_spill] sm:$0xff]  ;;  %v3600_v24 = vld [vmem:[#allocation9_spill] sm:$0xff] }
 0x1af   :  { %1013 = vmatpush.msrb.mxu0 %v434_v27  ;;  %v545_v61 = vsel %vm542_vm9, %v2755_v5, %v1919_v4  ;;  %1042 = vmatpush.msrb.mxu2 %v630_v33  ;;  %v1920_v5 = vunpack.i.h.bf16 %v2954_v16  ;;  %v1660_v6 = vunpack.i.h.bf16 %v3581_v50  ;;  %v518_v54 = vsel %vm514_vm12, %v1924_v44, %v1925_v19  ;;  %v3604_v60 = vld [vmem:[#allocation8_spill] sm:$0xff] }
 0x1b0   :  { %1005 = vmatpush.msra.mxu3 %v545_v61  ;;  %v1655_v56 = vunpack.i.h.bf16 %v3583_v35  ;;  %v379_v41 = vsel %vm374_vm10, %v1914_v15, %v1915_v34  ;;  %v1650_v29 = vunpack.i.h.bf16 %v3585_v52  ;;  %v3587_v55 = vunpack.i.l.bf16 %v3581_v50  ;;  %v3608_v34 = vld [vmem:[#allocation7_spill] sm:$0xff]  ;;  %v3611_v50 = vld [vmem:[#allocation6_spill] sm:$0xff] }
 0x1b1   :  { %1014 = vmatpush.msrb.mxu0 %v406_v11  ;;  %1043 = vmatpush.msrb.mxu2 %v602_v39  ;;  %v546_v42 = vsel %vm542_vm9, %v1919_v4, %v1920_v5  ;;  %v1645_v32 = vunpack.i.h.bf16 %v3588_v9  ;;  %v3590_v14 = vunpack.i.l.bf16 %v3583_v35  ;;  %vm3591_vm14 = vcmask 850944  }
 0x1b2   :  { %1006 = vmatpush.msra.mxu3 %v517_v48  ;;  %v351_v38 = vsel %vm346_vm0, %v3587_v55, %v1660_v6  ;;  %v1640_v10 = vunpack.i.h.bf16 %v3592_v13  ;;  %v687_v44 = vsel %vm682_vm2, %v2786_v0, %v681_v40  ;;  %v1635_v27 = vunpack.i.h.bf16 %v3596_v2 }
 0x1b3   :  { %1015 = vmatpush.msrb.mxu0 %v378_v31  ;;  %v2989_v28 = vpop.permute.xlu1 %566  ;;  %1564 = vmatmul.msk.f32.vlgmr.msra.gmra.mxu3 %vm887_vm8, %v2682_v49  ;;  %v1630_v39 = vunpack.i.h.bf16 %v3600_v24  ;;  %v3602_v0 = vunpack.i.l.bf16 %v3592_v13  ;;  %vm3603_vm2 = vcmask 875520   ;;  %vm3607_vm15 = vcmask 883712  }
 0x1b4   :  { %1051 = vmatpush.msrb.mxu3 %v491_v12  ;;  %v574_v20 = vsel %vm570_vm7, %v1890_v30, %v2989_v28  ;;  %v709_v18 = vpop.permute.xlu2 %708  ;;  %v407_v30 = vsel %vm402_vm11, %v1909_v45, %v1910_v36  ;;  %v323_v45 = vsel %vm3591_vm14, %v3590_v14, %v1655_v56  ;;  %v1625_v12 = vunpack.i.h.bf16 %v3604_v60  ;;  %v3605_v36 = vld [vmem:[#allocation15_spill] sm:$0xff] }
 0x1b5   :  { %1016 = vmatpush.msrb.mxu0 %v3579_v37  ;;  %1044 = vmatpush.msrb.mxu2 %v574_v20  ;;  %v715_v8 = vsel %vm710_vm1, %v2842_v51, %v709_v18  ;;  %v3598_v51 = vunpack.i.l.bf16 %v3588_v9  ;;  %vm3599_vm1 = vcmask 867328   ;;  %v239_v31 = vsel %vm3603_vm2, %v3602_v0, %v1640_v10 }
 0x1b6   :  { %1052 = vmatpush.msrb.mxu3 %v463_v21  ;;  %v597_v11 = vpop.permute.xlu0 %596  ;;  %v3606_v37 = vunpack.i.l.bf16 %v3596_v2  ;;  %v1615_v6 = vunpack.i.h.bf16 %v3611_v50  ;;  %v3614_v40 = vunpack.i.l.bf16 %v3608_v34  ;;  %vm3615_vm13 = vcmask 1031168   ;;  %v1103_v2 = vld [vmem:[%s3377_s5 + $0x10] sm:$0xff] }
 0x1b7   :  { %1017 = vmatpush.msrb.mxu0 %v3580_v58  ;;  %1045 = vmatpush.msrb.mxu2 %v546_v42  ;;  %v267_v33 = vsel %vm3599_vm1, %v3598_v51, %v1645_v32  ;;  %v1620_v58 = vunpack.i.h.bf16 %v3608_v34  ;;  %v603_v18 = vsel %vm598_vm6, %v2878_v47, %v597_v11  ;;  %v3616_v47 = vunpack.i.l.bf16 %v3611_v50  ;;  %vm3621_vm14 = vmmov %vm3615_vm13 }
 0x1b8   :  { %1053 = vmatpush.msrb.mxu3 %v435_v26  ;;  %v211_v21 = vsel %vm3607_vm15, %v3606_v37, %v1635_v27  ;;  %v2008_v26 = vld [vmem:[#allocation2 + $0x18] sm:$0xff]  ;;  %vm3617_vm6 = vcmask 1039360   ;;  %v1104_v27 = vld [vmem:[%s3377_s5 + $0x18] sm:$0xff] }
 0x1b9   :  { %1018 = vmatpush.msrb.mxu0 %v3582_v53  ;;  %1046 = vmatpush.msrb.mxu2 %v518_v54  ;;  %v127_v35 = vsel %vm3615_vm13, %v3614_v40, %v1620_v58 }
 0x1ba   :  { %1054 = vmatpush.msrb.mxu3 %v407_v30  ;;  %1565 = vmatmul.msk.f32.vlgmr.msrb.gmra.mxu2 %vm887_vm8, %v2682_v49 }
 0x1bb   :  { %1019 = vmatpush.msrb.mxu0 %v3584_v22  ;;  %v737_v1 = vpop.permute.xlu1 %736 }
 0x1bc   :  { %1055 = vmatpush.msrb.mxu3 %v379_v41  ;;  %v743_v63 = vsel %vm738_vm5, %v2902_v59, %v737_v1  ;;  %v3594_v59 = vunpack.i.l.bf16 %v3585_v52  ;;  %vm3595_vm5 = vcmask 859136   ;;  %v625_v4 = vpop.permute.xlu2 %624  ;;  %v99_v41 = vsel %vm3617_vm6, %v3616_v47, %v1615_v6 }
 0x1bd   :  { %1020 = vmatpush.msrb.mxu0 %v3586_v3  ;;  %1078 = vmatpush.msrb.mxu1 %v743_v63  ;;  %v631_v20 = vsel %vm626_vm4, %v2909_v46, %v625_v4  ;;  %v3612_v46 = vunpack.i.l.bf16 %v3604_v60  ;;  %vm3613_vm4 = vcmask 1022976  }
 0x1be   :  { %1056 = vmatpush.msrb.mxu3 %v351_v38  ;;  %v295_v15 = vsel %vm3595_vm5, %v3594_v59, %v1650_v29  ;;  %v513_v22 = vpop.permute.xlu0 %512  ;;  %v2009_v29 = vld [vmem:[#allocation2 + $0x20] sm:$0xff]  ;;  %vm3622_vm5 = vmmov %vm3617_vm6 }
 0x1bf   :  { %1021 = vmatpush.msrb.mxu0 %v3589_v57  ;;  %1079 = vmatpush.msrb.mxu1 %v715_v8  ;;  %v155_v53 = vsel %vm3613_vm4, %v3612_v46, %v1625_v12  ;;  %v519_v52 = vsel %vm514_vm12, %v1925_v19, %v513_v22  ;;  %vm3620_vm12 = vmmov %vm3607_vm15 }
 0x1c0   :  { %1057 = vmatpush.msrb.mxu3 %v323_v45  ;;  %vm3626_vm4 = vmmov %vm3620_vm12 }
 0x1c1   :  { %1022 = vmatpush.msrb.mxu0 %v3593_v25  ;;  %1080 = vmatpush.msrb.mxu1 %v687_v44  ;;  %vm3627_vm13 = vmmov %vm3626_vm4 }
 0x1c2   :  { %1058 = vmatpush.msrb.mxu3 %v295_v15  ;;  %vm3628_vm6 = vmmov %vm3621_vm14 }
 0x1c3   :  { %1023 = vmatpush.msrb.mxu0 %v3597_v62  ;;  %v653_v61 = vpop.permute.xlu1 %652 }
 0x1c4   :  { %1059 = vmatpush.msrb.mxu3 %v267_v33  ;;  %v659_v48 = vsel %vm654_vm3, %v2952_v7, %v653_v61  ;;  %v3609_v7 = vunpack.i.l.bf16 %v3600_v24  ;;  %vm3610_vm3 = vcmask 1014784   ;;  %v541_v30 = vpop.permute.xlu2 %540 }
 0x1c5   :  { %1024 = vmatpush.msrb.mxu0 %v3601_v17  ;;  %1081 = vmatpush.msrb.mxu1 %v659_v48  ;;  %v547_v1 = vsel %vm542_vm9, %v1920_v5, %v541_v30  ;;  %v1105_v48 = vld [vmem:[%s3377_s5 + $0x20] sm:$0xff]  ;;  %vm3619_vm9 = vmmov %vm3603_vm2 }
 0x1c6   :  { %1060 = vmatpush.msrb.mxu3 %v239_v31  ;;  %v183_v42 = vsel %vm3610_vm3, %v3609_v7, %v1630_v39  ;;  %vm3623_vm2 = vmmov %vm3599_vm1 }
 0x1c7   :  { %1025 = vmatpush.msrb.mxu0 %v3605_v36  ;;  %1082 = vmatpush.msrb.mxu1 %v631_v20  ;;  %vm3624_vm15 = vmmov %vm3619_vm9 }
 0x1c8   :  { %1061 = vmatpush.msrb.mxu3 %v211_v21  ;;  %vm3625_vm3 = vmmov %vm3619_vm9 }
 0x1c9   :  { %1026 = vmatpush.msrb.mxu0 %v2008_v26  ;;  %1083 = vmatpush.msrb.mxu1 %v603_v18 }
 0x1ca   :  { %1027 = vmatmul.f32.vlgmr.msrb.gmra.mxu0 %v2805_v43  ;;  %1062 = vmatpush.msrb.mxu3 %v183_v42 }
 0x1cb   :  { %v569_v54 = vpop.permute.xlu1 %568 }
 0x1cc   :  { %1063 = vmatpush.msrb.mxu3 %v155_v53  ;;  %v575_v56 = vsel %vm570_vm7, %v2989_v28, %v569_v54  ;;  %vm3618_vm7 = vmmov %vm3599_vm1 }
 0x1cd   :  { %1084 = vmatpush.msrb.mxu1 %v575_v56 }
 0x1ce   :  { %1064 = vmatpush.msrb.mxu3 %v127_v35 }
 0x1cf   :  { %1085 = vmatpush.msrb.mxu1 %v547_v1 }
 0x1d0   :  { %1065 = vmatpush.msrb.mxu3 %v99_v41 }
 0x1d1   :  { %1086 = vmatpush.msrb.mxu1 %v519_v52 }
 0x1d2   :  { %1066 = vmatpush.msrb.mxu3 %v2009_v29  ;;  %1566 = vmatmul.msk.f32.vlgmr.msrb.gmra.mxu1 %vm887_vm8, %v2682_v49  ;;  %v1101_v49 = vld [vmem:[%s3377_s5] sm:$0xff] }
 0x1d3   :  { %1067 = vmatmul.f32.vlgmr.msrb.gmra.mxu3 %v2805_v43  ;;  %v1102_v43 = vld [vmem:[%s3377_s5 + $0x8] sm:$0xff] }
 0x20b   :  { %v928_v28 = vpop.f32.mrf.mxu3 }
 0x215   :  { %v885_v3 = vpop.permute.xlu1 %884 }
 0x21d   :  { %v948_v55 = vpop.f32.mrf.mxu2 }
 0x21e   :  { %v949_v16 = vadd.f32 %v948_v55, %v885_v3 }
 0x222   :  { %v968_v38 = vpop.f32.mrf.mxu3 }
 0x223   :  { %v3086_v5 = vadd.f32 %v968_v38, %v949_v16 }
 0x225   :  { %v1092_v63 = vmax.f32 %v3086_v5, 0.0  ;;  %v3101_v32 = vmul.f32 %v1102_v43, %v3086_v5 }
 0x227   :  { %1097 = vst [vmem:[%s3378_s6 + $0x8] sm:$0xff] %v1092_v63  ;;  %v908_v23 = vpop.f32.mrf.mxu0 }
 0x228   :  { %v909_v19 = vadd.f32 %v908_v23, %v885_v3 }
 0x229   :  { %v988_v8 = vpop.f32.mrf.mxu1 }
 0x22a   :  { %v3098_v9 = vadd.f32 %v928_v28, %v909_v19  ;;  %v989_v13 = vadd.f32 %v988_v8, %v885_v3 }
 0x22c   :  { %v1091_v57 = vmax.f32 %v3098_v9, 0.0  ;;  %v3105_v14 = vmul.f32 %v1101_v49, %v3098_v9 }
 0x22e   :  { %1096 = vst [vmem:[%s3378_s6] sm:$0xff] %v1091_v57  ;;  %v1937_v45 = vpack.i.bf16 %v3101_v32, %v3105_v14 }
 0x230   :  { %1938 = vrot.lane.b32.xlu1 %v1937_v45, %s2021_s18  ;;  %1933 = vrot.lane.b32.xlu0 %v1937_v45, %s2031_s28 }
 0x231   :  { %1928 = vrot.lane.b32.xlu2 %v1937_v45, %s2034_s9 }
 0x236   :  { %v1008_v10 = vpop.f32.mrf.mxu3 }
 0x237   :  { %v3117_v25 = vadd.f32 %v1008_v10, %v989_v13 }
 0x238   :  { %1948 = vrot.lane.b32.xlu1 %v1937_v45, %s2017_s14  ;;  %1953 = vrot.lane.b32.xlu0 %v1937_v45, %s2016_s13 }
 0x239   :  { %1943 = vrot.lane.b32.xlu2 %v1937_v45, %s2018_s15  ;;  %v1093_v59 = vmax.f32 %v3117_v25, 0.0  ;;  %v3135_v51 = vmul.f32 %v1103_v2, %v3117_v25 }
 0x23b   :  { %1098 = vst [vmem:[%s3378_s6 + $0x10] sm:$0xff] %v1093_v59  ;;  %v3228_v59 = vld [vmem:[%s3379_s3] sm:$0xff] }
 0x23d   :  { %v1048_v44 = vpop.f32.mrf.mxu2 }
 0x240   :  { %1963 = vrot.lane.b32.xlu1 %v1937_v45, %s2012_s0 }
 0x241   :  { %1958 = vrot.lane.b32.xlu2 %v1937_v45, %s2013_s10 }
 0x247   :  { %v1028_v15 = vpop.f32.mrf.mxu0 }
 0x248   :  { %v1029_v4 = vadd.f32 %v1028_v15, %v885_v3 }
 0x24a   :  { %v3132_v62 = vadd.f32 %v1048_v44, %v1029_v4 }
 0x24c   :  { %v1094_v33 = vmax.f32 %v3132_v62, 0.0  ;;  %v3139_v11 = vmul.f32 %v1104_v27, %v3132_v62 }
 0x24e   :  { %1099 = vst [vmem:[%s3378_s6 + $0x18] sm:$0xff] %v1094_v33  ;;  %v1977_v61 = vpack.i.bf16 %v3139_v11, %v3135_v51 }
 0x24f   :  { %v1088_v39 = vpop.f32.mrf.mxu1 }
 0x250   :  { %1978 = vrot.lane.b32.xlu1 %v1977_v61, %s2021_s18  ;;  %1973 = vrot.lane.b32.xlu2 %v1977_v61, %s2031_s28 }
 0x251   :  { %1968 = vrot.lane.b32.xlu0 %v1977_v61, %s2034_s9 }
 0x256   :  { %v1068_v24 = vpop.f32.mrf.mxu3 }
 0x257   :  { %v1069_v17 = vadd.f32 %v1068_v24, %v885_v3 }
 0x258   :  { %2003 = vrot.lane.b32.xlu1 %v1977_v61, %s2012_s0  ;;  %1988 = vrot.lane.b32.xlu2 %v1977_v61, %s2017_s14 }
 0x259   :  { %1983 = vrot.lane.b32.xlu0 %v1977_v61, %s2018_s15  ;;  %v3152_v0 = vadd.f32 %v1088_v39, %v1069_v17 }
 0x25b   :  { %v1095_v31 = vmax.f32 %v3152_v0, 0.0  ;;  %v1110_v60 = vmul.f32 %v1105_v48, %v3152_v0 }
 0x25d   :  { %1100 = vst [vmem:[%s3378_s6 + $0x20] sm:$0xff] %v1095_v31 }
 0x260   :  { %1282 = vrot.lane.b32.xlu1 %v1110_v60, %s2034_s9  ;;  %1998 = vrot.lane.b32.xlu2 %v1977_v61, %s2013_s10 }
 0x261   :  { %1993 = vrot.lane.b32.xlu0 %v1977_v61, %s2016_s13 }
 0x268   :  { %1194 = vrot.lane.b32.xlu1 %v1110_v60, %s2017_s14  ;;  %1238 = vrot.lane.b32.xlu2 %v1110_v60, %s2021_s18 }
 0x269   :  { %1260 = vrot.lane.b32.xlu0 %v1110_v60, %s2031_s28 }
 0x270   :  { %1128 = vrot.lane.b32.xlu1 %v1110_v60, %s2012_s0  ;;  %1172 = vrot.lane.b32.xlu2 %v1110_v60, %s2016_s13 }
 0x271   :  { %1216 = vrot.lane.b32.xlu0 %v1110_v60, %s2018_s15 }
 0x278   :  { %1469 = vrot.lane.b32.xlu1 %v3117_v25, %s2012_s0  ;;  %1465 = vrot.lane.b32.xlu2 %v3098_v9, %s2012_s0 }
 0x279   :  { %1150 = vrot.lane.b32.xlu0 %v1110_v60, %s2013_s10 }
 0x280   :  { %1471 = vrot.lane.b32.xlu2 %v3132_v62, %s2012_s0 }
 0x281   :  { %1467 = vrot.lane.b32.xlu0 %v3086_v5, %s2012_s0 }
 0x289   :  { %1473 = vrot.lane.b32.xlu0 %v3152_v0, %s2012_s0 }
 0x28b   :  { %v1929_v12 = vpop.permute.xlu2 %1928 }
 0x28c   :  { %v1931_v36 = vunpack.i.h.bf16 %v1929_v12  ;;  %v1930_v37 = vunpack.i.l.bf16 %v1929_v12 }
 0x28e   :  { %v1284_v21 = vsel %vm402_vm11, %v1930_v37, %v1931_v36 }
 0x28f   :  { %1359 = vmatpush.msra.mxu2 %v1284_v21 }
 0x293   :  { %v3183_v20 = vpop.permute.xlu2 %1943 }
 0x294   :  { %v1946_v50 = vunpack.i.h.bf16 %v3183_v20  ;;  %v1945_v6 = vunpack.i.l.bf16 %v3183_v20 }
 0x296   :  { %v1218_v54 = vsel %vm3618_vm7, %v1945_v6, %v1946_v50  ;;  %vm3629_vm7 = vmmov %vm3628_vm6 }
 0x29b   :  { %v3189_v30 = vpop.permute.xlu2 %1958 }
 0x29c   :  { %v1961_v1 = vunpack.i.h.bf16 %v3189_v30  ;;  %v1960_v52 = vunpack.i.l.bf16 %v3189_v30 }
 0x29e   :  { %v1152_v55 = vsel %vm3621_vm14, %v1960_v52, %v1961_v1  ;;  %vm3633_vm14 = vmmov %vm3625_vm3 }
 0x2a2   :  { %v1939_v34 = vpop.permute.xlu1 %1938  ;;  %v1934_v58 = vpop.permute.xlu0 %1933 }
 0x2a3   :  { %v1941_v26 = vunpack.i.h.bf16 %v1939_v34  ;;  %v1940_v7 = vunpack.i.l.bf16 %v1939_v34  ;;  %v1936_v42 = vunpack.i.h.bf16 %v1934_v58  ;;  %v1935_v18 = vunpack.i.l.bf16 %v1934_v58 }
 0x2a5   :  { %v1262_v46 = vsel %vm374_vm10, %v1935_v18, %v1936_v42  ;;  %v1240_v53 = vsel %vm346_vm0, %v1940_v7, %v1941_v26 }
 0x2a6   :  { %1360 = vmatpush.msra.mxu2 %v1262_v46 }
 0x2a8   :  { %1361 = vmatpush.msra.mxu2 %v1240_v53 }
 0x2aa   :  { %v1949_v40 = vpop.permute.xlu1 %1948  ;;  %1362 = vmatpush.msra.mxu2 %v1218_v54  ;;  %v3194_v22 = vpop.permute.xlu0 %1953 }
 0x2ab   :  { %v1951_v35 = vunpack.i.h.bf16 %v1949_v40  ;;  %v1950_v56 = vunpack.i.l.bf16 %v1949_v40  ;;  %v1956_v47 = vunpack.i.h.bf16 %v3194_v22  ;;  %v1955_v41 = vunpack.i.l.bf16 %v3194_v22  ;;  %v3201_v28 = vpop.permute.xlu2 %1973 }
 0x2ac   :  { %v1976_v45 = vunpack.i.h.bf16 %v3201_v28  ;;  %v1975_v8 = vunpack.i.l.bf16 %v3201_v28 }
 0x2ad   :  { %v1196_v29 = vsel %vm3619_vm9, %v1950_v56, %v1951_v35  ;;  %v1174_v3 = vsel %vm3620_vm12, %v1955_v41, %v1956_v47  ;;  %vm3630_vm9 = vmmov %vm3622_vm5 }
 0x2ae   :  { %1363 = vmatpush.msra.mxu2 %v1196_v29  ;;  %v1263_v2 = vsel %vm374_vm10, %v1936_v42, %v1975_v8  ;;  %v1264_v27 = vsel %vm374_vm10, %v1975_v8, %v1976_v45  ;;  %vm3631_vm12 = vmmov %vm3622_vm5 }
 0x2b0   :  { %1364 = vmatpush.msra.mxu2 %v1174_v3 }
 0x2b2   :  { %v3209_v16 = vpop.permute.xlu1 %1963  ;;  %1365 = vmatpush.msra.mxu2 %v1152_v55 }
 0x2b3   :  { %v1966_v38 = vunpack.i.h.bf16 %v3209_v16  ;;  %v1965_v63 = vunpack.i.l.bf16 %v3209_v16  ;;  %v3216_v43 = vpop.permute.xlu2 %1988 }
 0x2b4   :  { %v1991_v17 = vunpack.i.h.bf16 %v3216_v43  ;;  %v1990_v31 = vunpack.i.l.bf16 %v3216_v43 }
 0x2b5   :  { %v1130_v23 = vsel %vm3622_vm5, %v1965_v63, %v1966_v38 }
 0x2b6   :  { %1366 = vmatpush.msra.mxu2 %v1130_v23  ;;  %v1197_v34 = vsel %vm3624_vm15, %v1951_v35, %v1990_v31  ;;  %v1198_v58 = vsel %vm3625_vm3, %v1990_v31, %v1991_v17 }
 0x2b8   :  { %1367 = vmatpush.msra.mxu2 %v3105_v14 }
 0x2b9   :  { %1567 = vmatmul.msk.f32.vlgmr.msra.gmra.mxu2 %vm887_vm8, %v3228_v59 }
 0x2bb   :  { %v3219_v19 = vpop.permute.xlu2 %1998 }
 0x2bc   :  { %v2001_v20 = vunpack.i.h.bf16 %v3219_v19  ;;  %v2000_v18 = vunpack.i.l.bf16 %v3219_v19 }
 0x2be   :  { %v1153_v56 = vsel %vm3628_vm6, %v1961_v1, %v2000_v18  ;;  %v1154_v41 = vsel %vm3629_vm7, %v2000_v18, %v2001_v20 }
 0x2c2   :  { %v3221_v49 = vpop.permute.xlu1 %1978 }
 0x2c3   :  { %v1969_v57 = vpop.permute.xlu0 %1968  ;;  %v1981_v15 = vunpack.i.h.bf16 %v3221_v49  ;;  %v1980_v14 = vunpack.i.l.bf16 %v3221_v49  ;;  %v1239_v48 = vpop.permute.xlu2 %1238 }
 0x2c4   :  { %v1971_v13 = vunpack.i.h.bf16 %v1969_v57  ;;  %v1970_v10 = vunpack.i.l.bf16 %v1969_v57 }
 0x2c5   :  { %v1241_v61 = vsel %vm346_vm0, %v1941_v26, %v1980_v14  ;;  %v1242_v24 = vsel %vm346_vm0, %v1980_v14, %v1981_v15  ;;  %v1243_v1 = vsel %vm346_vm0, %v1981_v15, %v1239_v48  ;;  %vm3634_vm0 = vmmov %vm3626_vm4 }
 0x2c6   :  { %v1285_v44 = vsel %vm402_vm11, %v1931_v36, %v1970_v10  ;;  %v1286_v4 = vsel %vm402_vm11, %v1970_v10, %v1971_v13  ;;  %v3251_v36 = vld [vmem:[%s3379_s3 + $0x8] sm:$0xff]  ;;  %vm3643_vm7 = vmmov %vm3634_vm0 }
 0x2c7   :  { %1382 = vmatpush.msra.mxu0 %v1285_v44  ;;  %1405 = vmatpush.msra.mxu1 %v1286_v4 }
 0x2c8   :  { %1568 = vmatmul.msk.f32.gmra.mxu2 %vm887_vm8, %v3251_v36 }
 0x2c9   :  { %1383 = vmatpush.msra.mxu0 %v1263_v2  ;;  %1406 = vmatpush.msra.mxu1 %v1264_v27 }
 0x2ca   :  { %v3240_v33 = vpop.permute.xlu1 %2003 }
 0x2cb   :  { %v1984_v39 = vpop.permute.xlu0 %1983  ;;  %1384 = vmatpush.msra.mxu0 %v1241_v61  ;;  %1407 = vmatpush.msra.mxu1 %v1242_v24  ;;  %v2006_v46 = vunpack.i.h.bf16 %v3240_v33  ;;  %v2005_v53 = vunpack.i.l.bf16 %v3240_v33  ;;  %v1173_v54 = vpop.permute.xlu2 %1172 }
 0x2cc   :  { %v1986_v60 = vunpack.i.h.bf16 %v1984_v39  ;;  %v1985_v12 = vunpack.i.l.bf16 %v1984_v39 }
 0x2cd   :  { %v1131_v29 = vsel %vm3630_vm9, %v1966_v38, %v2005_v53  ;;  %v1132_v22 = vsel %vm3631_vm12, %v2005_v53, %v2006_v46 }
 0x2ce   :  { %v1219_v37 = vsel %vm3599_vm1, %v1946_v50, %v1985_v12  ;;  %v1220_v21 = vsel %vm3623_vm2, %v1985_v12, %v1986_v60  ;;  %vm3636_vm2 = vmmov %vm3622_vm5 }
 0x2cf   :  { %1385 = vmatpush.msra.mxu0 %v1219_v37  ;;  %1408 = vmatpush.msra.mxu1 %v1220_v21  ;;  %vm3637_vm15 = vmmov %vm3636_vm2 }
 0x2d0   :  { %vm3638_vm3 = vmmov %vm3636_vm2 }
 0x2d1   :  { %1386 = vmatpush.msra.mxu0 %v1197_v34  ;;  %1409 = vmatpush.msra.mxu1 %v1198_v58 }
 0x2d2   :  { %v1283_v26 = vpop.permute.xlu1 %1282 }
 0x2d3   :  { %v1287_v7 = vsel %vm402_vm11, %v1971_v13, %v1283_v26  ;;  %v1994_v42 = vpop.permute.xlu0 %1993  ;;  %v1466_v3 = vpop.permute.xlu2 %1465 }
 0x2d4   :  { %v1996_v50 = vunpack.i.h.bf16 %v1994_v42  ;;  %v1995_v6 = vunpack.i.l.bf16 %v1994_v42  ;;  %1575 = vmatpush.msrb.mxu2 %v1287_v7 }
 0x2d6   :  { %v1175_v40 = vsel %vm3626_vm4, %v1956_v47, %v1995_v6  ;;  %v1176_v35 = vsel %vm3627_vm13, %v1995_v6, %v1996_v50  ;;  %v1177_v16 = vsel %vm3634_vm0, %v1996_v50, %v1173_v54  ;;  %vm3639_vm4 = vmmov %vm3636_vm2 }
 0x2d7   :  { %1387 = vmatpush.msra.mxu0 %v1175_v40  ;;  %1410 = vmatpush.msra.mxu1 %v1176_v35  ;;  %vm3641_vm13 = vmmov %vm3634_vm0 }
 0x2d9   :  { %1388 = vmatpush.msra.mxu0 %v1153_v56  ;;  %1411 = vmatpush.msra.mxu1 %v1154_v41 }
 0x2da   :  { %v1195_v52 = vpop.permute.xlu1 %1194 }
 0x2db   :  { %v1261_v47 = vpop.permute.xlu0 %1260  ;;  %1389 = vmatpush.msra.mxu0 %v1131_v29  ;;  %1412 = vmatpush.msra.mxu1 %v1132_v22  ;;  %v1199_v55 = vsel %vm3633_vm14, %v1991_v17, %v1195_v52  ;;  %v1472_v38 = vpop.permute.xlu2 %1471 }
 0x2dc   :  { %v1265_v30 = vsel %vm374_vm10, %v1976_v45, %v1261_v47  ;;  %vm3632_vm10 = vmmov %vm3599_vm1 }
 0x2dd   :  { %1390 = vmatpush.msra.mxu0 %v3101_v32  ;;  %1413 = vmatpush.msra.mxu1 %v3135_v51  ;;  %vm3635_vm1 = vmmov %vm3628_vm6 }
 0x2de   :  { %1576 = vmatpush.msrb.mxu2 %v1265_v30  ;;  %1569 = vmatmul.msk.f32.vlgmr.msra.gmra.mxu0 %vm887_vm8, %v3228_v59  ;;  %vm3642_vm6 = vmmov %vm3634_vm0 }
 0x2df   :  { %1428 = vmatpush.msrb.mxu1 %v1287_v7 }
 0x2e0   :  { %1571 = vmatmul.msk.f32.vlgmr.msra.gmra.mxu1 %vm887_vm8, %v3228_v59  ;;  %1577 = vmatpush.msrb.mxu2 %v1243_v1 }
 0x2e1   :  { %1429 = vmatpush.msrb.mxu1 %v1265_v30 }
 0x2e2   :  { %v1129_v28 = vpop.permute.xlu1 %1128 }
 0x2e3   :  { %1430 = vmatpush.msrb.mxu1 %v1243_v1  ;;  %v1217_v32 = vpop.permute.xlu0 %1216  ;;  %v1133_v57 = vsel %vm3636_vm2, %v2006_v46, %v1129_v28 }
 0x2e4   :  { %v1221_v51 = vsel %vm3632_vm10, %v1986_v60, %v1217_v32 }
 0x2e5   :  { %1431 = vmatpush.msrb.mxu1 %v1221_v51  ;;  %1578 = vmatpush.msrb.mxu2 %v1221_v51 }
 0x2e6   :  { %1570 = vmatmul.msk.f32.gmra.mxu0 %vm887_vm8, %v3251_v36 }
 0x2e7   :  { %1432 = vmatpush.msrb.mxu1 %v1199_v55  ;;  %1579 = vmatpush.msrb.mxu2 %v1199_v55 }
 0x2e8   :  { %1572 = vmatmul.msk.f32.gmra.mxu1 %vm887_vm8, %v3251_v36 }
 0x2e9   :  { %1433 = vmatpush.msrb.mxu1 %v1177_v16  ;;  %1580 = vmatpush.msrb.mxu2 %v1177_v16 }
 0x2ea   :  { %v1470_v63 = vpop.permute.xlu1 %1469 }
 0x2eb   :  { %v1477_v23 = vsel %vm3622_vm5, %v1470_v63, %v1472_v38  ;;  %v1151_v43 = vpop.permute.xlu0 %1150 }
 0x2ec   :  { %v1486_v19 = vmax.f32 %v3117_v25, %v1477_v23  ;;  %v1155_v49 = vsel %vm3635_vm1, %v2001_v20, %v1151_v43 }
 0x2ed   :  { %1434 = vmatpush.msrb.mxu1 %v1155_v49  ;;  %1581 = vmatpush.msrb.mxu2 %v1155_v49 }
 0x2ee   :  { %1498 = vrot.lane.b32.xlu0 %v1486_v19, %s2016_s13 }
 0x2ef   :  { %1435 = vmatpush.msrb.mxu1 %v1133_v57  ;;  %1582 = vmatpush.msrb.mxu2 %v1133_v57 }
 0x2f1   :  { %1436 = vmatpush.msrb.mxu1 %v3139_v11  ;;  %1583 = vmatpush.msrb.mxu2 %v3139_v11 }
 0x2f2   :  { %1574 = vmatmul.msk.f32.vlgmr.msrb.gmra.mxu2 %vm887_vm8, %v3251_v36  ;;  %1573 = vmatmul.msk.f32.vlgmr.msrb.gmra.mxu1 %vm887_vm8, %v3228_v59  ;;  %vm3640_vm8 = vmmov %vm3634_vm0 }
 0x2f3   :  { %v1468_v25 = vpop.permute.xlu0 %1467 }
 0x2f4   :  { %v1475_v45 = vsel %vm3637_vm15, %v1466_v3, %v1468_v25  ;;  %v1476_v8 = vsel %vm3638_vm3, %v1468_v25, %v1470_v63 }
 0x2f5   :  { %v1484_v13 = vmax.f32 %v3098_v9, %v1475_v45  ;;  %v1485_v10 = vmax.f32 %v3086_v5, %v1476_v8  ;;  %v1335_v9 = vld [vmem:[%s3380_s4 + $0x8] sm:$0xff]  ;;  %v1334_v5 = vld [vmem:[%s3380_s4] sm:$0xff] }
 0x2f6   :  { %1338 = vperm.xlu0 %2007, %v1334_v5  }
 0x2f7   :  { %1496 = vrot.lane.b32.xlu2 %v1485_v10, %s2016_s13  ;;  %1494 = vrot.lane.b32.xlu1 %v1484_v13, %s2016_s13 }
 0x2fb   :  { %v1474_v11 = vpop.permute.xlu0 %1473 }
 0x2fc   :  { %v1478_v15 = vsel %vm3639_vm4, %v1472_v38, %v1474_v11  ;;  %v1488_v14 = vmax.f32 %v3152_v0, %v1474_v11 }
 0x2fd   :  { %v1487_v59 = vmax.f32 %v3132_v62, %v1478_v15 }
 0x2ff   :  { %1502 = vrot.lane.b32.xlu2 %v1488_v14, %s2016_s13  ;;  %1500 = vrot.lane.b32.xlu1 %v1487_v59, %s2016_s13 }
 0x307   :  { %1343 = vperm.xlu1 %1926, %v1335_v9  }
 0x33c   :  { %v1369_v62 = vpop.f32.mrf.mxu2 }
 0x34b   :  { %v1372_v12 = vpop.f32.mrf.mxu2 }
 0x351   :  { %v1497_v44 = vpop.permute.xlu2 %1496 }
 0x359   :  { %v1503_v33 = vpop.permute.xlu2 %1502 }
 0x35a   :  { %v1517_v61 = vmax.f32 %v1488_v14, %v1503_v33 }
 0x35b   :  { %v1392_v48 = vpop.f32.mrf.mxu0 }
 0x35c   :  { %v1522_v31 = vmax.f32 %v1517_v61, 0.0 }
 0x35d   :  { %v1415_v36 = vpop.f32.mrf.mxu1 }
 0x360   :  { %v1499_v4 = vpop.permute.xlu0 %1498 }
 0x361   :  { %v1505_v0 = vsel %vm3640_vm8, %v1497_v44, %v1499_v4 }
 0x362   :  { %v1514_v2 = vmax.f32 %v1485_v10, %v1505_v0 }
 0x363   :  { %v1395_v20 = vpop.f32.mrf.mxu0 }
 0x364   :  { %v1519_v27 = vmax.f32 %v1514_v2, 0.0 }
 0x365   :  { %v1418_v18 = vpop.f32.mrf.mxu1 }
 0x366   :  { %1530 = vrot.lane.b32.xlu1 %v1519_v27, %s2034_s9 }
 0x368   :  { %v1339_v29 = vpop.permute.xlu0 %1338 }
 0x369   :  { %v1495_v24 = vpop.permute.xlu1 %1494  ;;  %v1370_v22 = vadd.f32 %v1369_v62, %v1339_v29  ;;  %v1393_v47 = vadd.f32 %v1392_v48, %v1339_v29  ;;  %v1416_v30 = vadd.f32 %v1415_v36, %v1339_v29 }
 0x36a   :  { %v1504_v39 = vsel %vm3641_vm13, %v1495_v24, %v1497_v44 }
 0x36b   :  { %v1513_v17 = vmax.f32 %v1484_v13, %v1504_v39  ;;  %v1444_v1 = vmax.f32 %v1370_v22, 0.0  ;;  %v1445_v3 = vmax.f32 %v1393_v47, 0.0  ;;  %v1446_v28 = vmax.f32 %v1416_v30, 0.0 }
 0x36d   :  { %v1518_v60 = vmax.f32 %v1513_v17, 0.0  ;;  %1452 = vst [vmem:[%s3381_s7] sm:$0xff] %v1444_v1 }
 0x36e   :  { %1536 = vrot.lane.b32.xlu1 %v1522_v31, %s2034_s9  ;;  %1453 = vst [vmem:[%s3381_s7 + $0x8] sm:$0xff] %v1445_v3 }
 0x36f   :  { %1528 = vrot.lane.b32.xlu2 %v1518_v60, %s2034_s9  ;;  %1454 = vst [vmem:[%s3381_s7 + $0x10] sm:$0xff] %v1446_v28  ;;  %v1438_v32 = vpop.f32.mrf.mxu1 }
 0x370   :  { %v1439_v51 = vadd.f32 %v1438_v32, %v1339_v29 }
 0x371   :  { %v1501_v37 = vpop.permute.xlu1 %1500 }
 0x372   :  { %v1506_v21 = vsel %vm3642_vm6, %v1499_v4, %v1501_v37  ;;  %v1507_v34 = vsel %vm3643_vm7, %v1501_v37, %v1503_v33  ;;  %v1447_v55 = vmax.f32 %v1439_v51, 0.0 }
 0x373   :  { %v1515_v58 = vmax.f32 %v1486_v19, %v1506_v21  ;;  %v1516_v26 = vmax.f32 %v1487_v59, %v1507_v34 }
 0x374   :  { %1455 = vst [vmem:[%s3381_s7 + $0x18] sm:$0xff] %v1447_v55 }
 0x375   :  { %v1520_v7 = vmax.f32 %v1515_v58, 0.0  ;;  %v1521_v42 = vmax.f32 %v1516_v26, 0.0  ;;  %v1441_v50 = vpop.f32.mrf.mxu2 }
 0x377   :  { %1534 = vrot.lane.b32.xlu0 %v1521_v42, %s2034_s9  ;;  %1532 = vrot.lane.b32.xlu2 %v1520_v7, %s2034_s9 }
 0x379   :  { %v1344_v6 = vpop.permute.xlu1 %1343 }
 0x37a   :  { %v1373_v46 = vadd.f32 %v1372_v12, %v1344_v6  ;;  %v1396_v53 = vadd.f32 %v1395_v20, %v1344_v6  ;;  %v1419_v54 = vadd.f32 %v1418_v18, %v1344_v6  ;;  %v1442_v40 = vadd.f32 %v1441_v50, %v1344_v6 }
 0x37c   :  { %v1448_v35 = vmax.f32 %v1373_v46, 0.0  ;;  %v1449_v56 = vmax.f32 %v1396_v53, 0.0  ;;  %v1450_v41 = vmax.f32 %v1419_v54, 0.0  ;;  %v1451_v52 = vmax.f32 %v1442_v40, 0.0 }
 0x37e   :  { %1456 = vst [vmem:[%s3381_s7 + $0x20] sm:$0xff] %v1448_v35 }
 0x37f   :  { %1457 = vst [vmem:[%s3381_s7 + $0x28] sm:$0xff] %v1449_v56 }
 0x380   :  { %1458 = vst [vmem:[%s3381_s7 + $0x30] sm:$0xff] %v1450_v41 }
 0x381   :  { %1459 = vst [vmem:[%s3381_s7 + $0x38] sm:$0xff] %v1451_v52 }
 0x3c9   :  { %v1529_v16 = vpop.permute.xlu2 %1528 }
 0x3d1   :  { %v1533_v38 = vpop.permute.xlu2 %1532 }
 0x3d8   :  { %v1531_v63 = vpop.permute.xlu1 %1530 }
 0x3d9   :  { %v1538_v23 = vsel %vm402_vm11, %v1529_v16, %v1531_v63  ;;  %v1539_v43 = vsel %vm402_vm11, %v1531_v63, %v1533_v38 }
 0x3da   :  { %1546 = vst [vmem:[%s3382_s8] sm:$0xff] %v1538_v23 }
 0x3db   :  { %1547 = vst [vmem:[%s3382_s8 + $0x8] sm:$0xff] %v1539_v43 }
 0x3e0   :  { %v1537_v19 = vpop.permute.xlu1 %1536 }
 0x3e9   :  { %v1535_v49 = vpop.permute.xlu0 %1534 }
 0x3ea   :  { %v1540_v57 = vsel %vm402_vm11, %v1533_v38, %v1535_v49  ;;  %v1541_v25 = vsel %vm402_vm11, %v1535_v49, %v1537_v19 }
 0x3eb   :  { %1548 = vst [vmem:[%s3382_s8 + $0x10] sm:$0xff] %v1540_v57 }
 0x3ec   :  { %1549 = vst [vmem:[%s3382_s8 + $0x18] sm:$0xff] %v1541_v25 }

</bundles_post_ra>
